<compile_context>
chip_gen: v7x
topology: tpu7x:2x2x1
jax: 0.10.0
libtpu: 0.0.40
codegen_flags: <defaults>
</compile_context>

<pallas_src>
import functools
import math

import numpy as np
import jax
import jax.numpy as jnp
from jax.experimental import pallas as pl
from jax.experimental.pallas import tpu as pltpu

POOL = 7                 # pool_output_size = (7, 7)
SAMPLING_RATIO = 4
CANONICAL_SCALE = 224    # torchvision LevelMapper defaults
CANONICAL_LEVEL = 4
LVL_EPS = 1e-6
BOX_BLOCK = 8            # boxes processed per grid step


# ----------------------------------------------------------------------------
# Glue: scale inference + level assignment (torchvision MultiScaleRoIAlign)
# ----------------------------------------------------------------------------
def _infer_scales(feat_sizes, image_size):
    scales = []
    for (fh, fw) in feat_sizes:
        possible = []
        for s, s_orig in zip((fh, fw), image_size):
            approx = float(s) / float(s_orig)
            possible.append(2.0 ** float(round(math.log2(approx))))
        assert possible[0] == possible[1]
        scales.append(possible[0])
    return scales


def _assign_levels(boxes, scales):
    lvl_min = -math.log2(scales[0])
    lvl_max = -math.log2(scales[-1])
    area = (boxes[:, 2] - boxes[:, 0]) * (boxes[:, 3] - boxes[:, 1])
    s = jnp.sqrt(area)
    target = jnp.floor(CANONICAL_LEVEL + jnp.log2(s / CANONICAL_SCALE + LVL_EPS))
    target = jnp.clip(target, lvl_min, lvl_max)
    return (target - lvl_min).astype(jnp.int32)


# ----------------------------------------------------------------------------
# Glue: per-box separable RoIAlign interpolation matrices (one spatial axis)
# ----------------------------------------------------------------------------
def _axis_weights(start, end, feat_size, max_size):
    """Returns [N, POOL, max_size]; row ph holds the sum over the SAMPLING_RATIO
    sample points of that bin of the bilinear weights onto the axis.
    (Float equality one-hot is fine while feature sizes stay << 2^24.)"""
    roi_len = jnp.maximum(end - start, 1.0)                  # aligned=False clamp
    bin_sz = roi_len / POOL                                  # [N]
    ph = jnp.arange(POOL, dtype=jnp.float32)
    it = jnp.arange(SAMPLING_RATIO, dtype=jnp.float32)
    # sample coordinate y: [N, POOL, S]
    y = (start[:, None, None]
         + ph[None, :, None] * bin_sz[:, None, None]
         + (it[None, None, :] + 0.5) * bin_sz[:, None, None] / SAMPLING_RATIO)
    fs = feat_size[:, None, None]
    valid = jnp.logical_and(y >= -1.0, y <= fs).astype(jnp.float32)
    yc = jnp.maximum(y, 0.0)
    y_floor = jnp.floor(yc)
    hi_clamp = y_floor >= fs - 1.0
    y_low = jnp.minimum(y_floor, fs - 1.0)
    y_high = jnp.minimum(y_low + 1.0, fs - 1.0)
    ly = jnp.where(hi_clamp, 0.0, yc - y_low)
    hy = 1.0 - ly
    idx = jnp.arange(max_size, dtype=jnp.float32)
    oh_low = (idx[None, None, None, :] == y_low[..., None]).astype(jnp.float32)
    oh_high = (idx[None, None, None, :] == y_high[..., None]).astype(jnp.float32)
    w = valid[..., None] * (hy[..., None] * oh_low + ly[..., None] * oh_high)
    return jnp.sum(w, axis=2)                                # [N, POOL, max_size]


# ----------------------------------------------------------------------------
# Pallas kernel: one block of NB same-level boxes per grid step.
#   dot1 (MXU, bf16->f32): [C*Hmax, Wmax] @ [Wmax, NB*POOL] folds channels and
#   the whole box batch into a single wide matmul.
#   dot2 (small, f32): per box, batched over C: Ay_b @ G_b  -> [C, 7, 7].
# ----------------------------------------------------------------------------
def _roi_align_kernel(block_lv_ref, feat_ref, ay_ref, axt_ref, out_ref,
                      *, C, Hmax, NB):
    del block_lv_ref                      # only consumed by the index_maps
    f2d = feat_ref[0]                     # [C*Hmax, Wmax]   bf16
    axt = axt_ref[0]                      # [Wmax, NB*POOL]  bf16
    g = jax.lax.dot_general(              # [C*Hmax, NB*POOL] f32
        f2d, axt, (((1,), (0,)), ((), ())),
        preferred_element_type=jnp.float32)
    for b in range(NB):                   # small static unroll (NB = 8)
        g3 = g[:, b * POOL:(b + 1) * POOL].reshape(C, Hmax, POOL)  # free reshape
        ay_b = ay_ref[0, b]               # [POOL, Hmax] f32
        ay_c = jnp.broadcast_to(ay_b[None, :, :], (C, POOL, Hmax))
        out_ref[b] = jax.lax.dot_general(  # batched over C -> [C, POOL, POOL]
            ay_c, g3, (((2,), (1,)), ((0,), (0,))),
            preferred_element_type=jnp.float32)


# ----------------------------------------------------------------------------
# ROINetwork.forward equivalent
# ----------------------------------------------------------------------------
def roi_network_forward(fpn_feature_map_outputs, proposals, image_size,
                        box_block=BOX_BLOCK):
    # dict(sorted(...)) like the torch module; drop batch dim (single image)
    items = sorted(fpn_feature_map_outputs.items())
    feats = [jnp.asarray(v)[0] for _, v in items]            # each [C, H, W]
    feat_sizes = [(int(f.shape[1]), int(f.shape[2])) for f in feats]
    scales = _infer_scales(feat_sizes, image_size)

    boxes = jnp.asarray(proposals, jnp.float32)
    levels = _assign_levels(boxes, scales)                   # [N] int32

    L = len(feats)
    C = int(feats[0].shape[0])
    Hmax = max(h for h, _ in feat_sizes)
    Wmax = max(w for _, w in feat_sizes)
    N = int(boxes.shape[0])
    NB = int(box_block)

    # Feature stack: [L, C*Hmax, Wmax] in bf16 (channels folded into rows).
    # TODO(synk): at production FPN sizes, DMA only the valid [C, H_lvl, W_lvl]
    # sub-block (manual copy / per-level call) instead of zero-padding every
    # level to [Hmax, Wmax]; harmless here but wasteful at scale.
    stacked = jnp.zeros((L, C, Hmax, Wmax), jnp.float32)
    for i, f in enumerate(feats):
        stacked = stacked.at[i, :, : f.shape[1], : f.shape[2]].set(f)
    stacked = stacked.reshape(L, C * Hmax, Wmax).astype(jnp.bfloat16)

    # Per-box separable interpolation weights.
    sc_b = jnp.asarray(scales, jnp.float32)[levels]
    h_b = jnp.asarray([h for h, _ in feat_sizes], jnp.float32)[levels]
    w_b = jnp.asarray([w for _, w in feat_sizes], jnp.float32)[levels]
    x1, y1, x2, y2 = (boxes[:, 0] * sc_b, boxes[:, 1] * sc_b,
                      boxes[:, 2] * sc_b, boxes[:, 3] * sc_b)
    count = float(SAMPLING_RATIO * SAMPLING_RATIO)
    ay = _axis_weights(y1, y2, h_b, Hmax) / count            # [N, POOL, Hmax]
    ax = _axis_weights(x1, x2, w_b, Wmax)                    # [N, POOL, Wmax]

    # --- level-sorted packing into blocks of NB same-level boxes -------------
    # Each level's box list is padded to a multiple of NB (pad slots carry
    # all-zero weights -> zero output, discarded). Consecutive grid steps hit
    # the same feature block index, so Pallas skips the feature DMA for all but
    # the first block of each level.
    order = jnp.argsort(levels)                              # level-sorted order
    sorted_lv = levels[order]
    counts = jnp.bincount(levels, length=L)
    padded_counts = ((counts + NB - 1) // NB) * NB
    pad_ends = jnp.cumsum(padded_counts)
    pad_starts = pad_ends - padded_counts
    raw_starts = jnp.cumsum(counts) - counts
    within = jnp.arange(N, dtype=counts.dtype) - raw_starts[sorted_lv]
    slots_sorted = (pad_starts[sorted_lv] + within).astype(jnp.int32)

    Ncap = ((N + L * (NB - 1) + NB - 1) // NB) * NB          # static capacity
    num_blocks = Ncap // NB

    ay_slots = jnp.zeros((Ncap, POOL, Hmax), jnp.float32).at[slots_sorted].set(ay[order])
    ax_slots = jnp.zeros((Ncap, POOL, Wmax), jnp.float32).at[slots_sorted].set(ax[order])
    ay_blocks = ay_slots.reshape(num_blocks, NB, POOL, Hmax)
    axt_blocks = (ax_slots.reshape(num_blocks, NB * POOL, Wmax)
                  .transpose(0, 2, 1).astype(jnp.bfloat16))  # [blk, Wmax, NB*POOL]

    block_starts = jnp.arange(num_blocks, dtype=jnp.int32) * NB
    block_levels = jnp.minimum(
        jnp.searchsorted(pad_ends, block_starts, side="right"), L - 1
    ).astype(jnp.int32)

    kernel = functools.partial(_roi_align_kernel, C=C, Hmax=Hmax, NB=NB)
    out_slots = pl.pallas_call(
        kernel,
        out_shape=jax.ShapeDtypeStruct((Ncap, C, POOL, POOL), jnp.float32),
        grid_spec=pltpu.PrefetchScalarGridSpec(
            num_scalar_prefetch=1,
            grid=(num_blocks,),
            in_specs=[
                # feature level selected per-block via scalar-prefetched level ids;
                # identical consecutive indices -> DMA skipped (level-sorted blocks)
                pl.BlockSpec((1, C * Hmax, Wmax), lambda j, lv: (lv[j], 0, 0)),
                pl.BlockSpec((1, NB, POOL, Hmax), lambda j, lv: (j, 0, 0, 0)),
                pl.BlockSpec((1, Wmax, NB * POOL), lambda j, lv: (j, 0, 0)),
            ],
            out_specs=pl.BlockSpec((NB, C, POOL, POOL), lambda j, lv: (j, 0, 0, 0)),
        ),
        compiler_params=pltpu.CompilerParams(dimension_semantics=("parallel",)),
    )(block_levels, stacked, ay_blocks, axt_blocks)

    # Gather results back to the original box order.
    slot_of = jnp.zeros((N,), jnp.int32).at[order].set(slots_sorted)
    return out_slots[slot_of]                                # [N, C, 7, 7]


# ----------------------------------------------------------------------------
# Pure numpy reference (direct transcription of torchvision roi_align, aligned=False)
# ----------------------------------------------------------------------------
def _bilinear_ref(feat, y, x, H, W):
    if y < -1.0 or y > H or x < -1.0 or x > W:
        return np.zeros((feat.shape[0],), np.float64)
    y = max(y, 0.0); x = max(x, 0.0)
    y_low = int(y); x_low = int(x)
    if y_low >= H - 1:
        y_high = y_low = H - 1; y = float(y_low)
    else:
        y_high = y_low + 1
    if x_low >= W - 1:
        x_high = x_low = W - 1; x = float(x_low)
    else:
        x_high = x_low + 1
    ly, lx = y - y_low, x - x_low
    hy, hx = 1.0 - ly, 1.0 - lx
    return (hy * hx * feat[:, y_low, x_low] + hy * lx * feat[:, y_low, x_high]
            + ly * hx * feat[:, y_high, x_low] + ly * lx * feat[:, y_high, x_high]
            ).astype(np.float64)


def _roi_align_reference(feats, boxes, levels, scales):
    N, C = boxes.shape[0], feats[0].shape[0]
    out = np.zeros((N, C, POOL, POOL), np.float32)
    for b in range(N):
        lvl = int(levels[b]); feat = feats[lvl]
        H, W = feat.shape[1], feat.shape[2]
        scale = scales[lvl]
        x1, y1, x2, y2 = [float(v) * scale for v in boxes[b]]
        roi_w, roi_h = max(x2 - x1, 1.0), max(y2 - y1, 1.0)
        bw, bh = roi_w / POOL, roi_h / POOL
        count = SAMPLING_RATIO * SAMPLING_RATIO
        for ph in range(POOL):
            for pw in range(POOL):
                acc = np.zeros((C,), np.float64)
                for it in range(SAMPLING_RATIO):
                    y = y1 + ph * bh + (it + 0.5) * bh / SAMPLING_RATIO
                    for jt in range(SAMPLING_RATIO):
                        x = x1 + pw * bw + (jt + 0.5) * bw / SAMPLING_RATIO
                        acc += _bilinear_ref(feat, y, x, H, W)
                out[b, :, ph, pw] = (acc / count).astype(np.float32)
    return out


if __name__ == "__main__":
    image_size = (256, 256)
    C = 4
    names = ["fpn0", "fpn1", "fpn2", "fpn3"]
    feat_sizes = [(64, 64), (32, 32), (16, 16), (8, 8)]

    key = jax.random.PRNGKey(0)
    fmaps = {}
    for name, (h, w) in zip(names, feat_sizes):
        key, sub = jax.random.split(key)
        fmaps[name] = jax.random.normal(sub, (1, C, h, w), jnp.float32)  # NCHW, batch=1

    proposals = jnp.array(
        [[10.0, 12.0, 40.0, 50.0],     # small  -> fpn0
         [0.0, 0.0, 200.0, 220.0],     # large  -> fpn1
         [30.0, 20.0, 250.0, 240.0],   # large  -> fpn1
         [100.0, 100.0, 140.0, 160.0], # small  -> fpn0
         [-8.0, -6.0, 30.0, 30.0],     # partially out of bounds
         [50.0, 0.0, 256.0, 200.0],    # large  -> fpn1
         [100.0, 100.0, 100.5, 101.0], # tiny (width clamped to 1.0)
         [0.0, 0.0, 400.0, 420.0]],    # larger than image -> fpn2
        dtype=jnp.float32)

    out = jax.block_until_ready(roi_network_forward(fmaps, proposals, image_size))

    # correctness check against a direct torchvision-semantics reference
    scales = _infer_scales(feat_sizes, image_size)
    levels = np.asarray(_assign_levels(proposals, scales))
    feats_np = [np.asarray(fmaps[n][0]) for n in names]
    ref = _roi_align_reference(feats_np, np.asarray(proposals), levels, scales)
    np.testing.assert_allclose(np.asarray(out), ref, rtol=2e-2, atol=2e-2)

    # TODO(synk): only a single image (batch=1) is supported, matching the
    # module's forward which passes boxes=[proposals] for one image_shape.
    print("KERNEL_OK")
</pallas_src>

<mosaic_0001>
module attributes {stable_mosaic.version = 11 : i64} {
  func.func @_roi_align_kernel(%arg0: i32, %arg1: memref<5xi32, #tpu.memory_space<smem>>, %arg2: memref<1x256x64xbf16, #tpu.memory_space<vmem>>, %arg3: memref<1x8x7x64xf32, #tpu.memory_space<vmem>>, %arg4: memref<1x64x56xbf16, #tpu.memory_space<vmem>>, %arg5: memref<8x4x7x7xf32, #tpu.memory_space<vmem>>) attributes {dimension_semantics = [#tpu.dimension_semantics<parallel>], iteration_bounds = array<i64: 5>, scalar_prefetch = 1 : i64, scratch_operands = 0 : i64, tpu.core_type = #tpu.core_type<tc>, window_params = [{transform_indices = @transform_0, window_bounds = array<i64: 1, 256, 64>}, {transform_indices = @transform_1, window_bounds = array<i64: 1, 8, 7, 64>}, {transform_indices = @transform_2, window_bounds = array<i64: 1, 64, 56>}, {transform_indices = @transform_3, window_bounds = array<i64: 8, 4, 7, 7>}]} {
    %c0 = arith.constant 0 : index
    %c0_0 = arith.constant 0 : index
    %c0_1 = arith.constant 0 : index
    %0 = vector.load %arg2[%c0, %c0_0, %c0_1] : memref<1x256x64xbf16, #tpu.memory_space<vmem>>, vector<1x256x64xbf16>
    %1 = vector.shape_cast %0 : vector<1x256x64xbf16> to vector<256x64xbf16>
    %c0_2 = arith.constant 0 : index
    %c0_3 = arith.constant 0 : index
    %c0_4 = arith.constant 0 : index
    %2 = vector.load %arg4[%c0_2, %c0_3, %c0_4] : memref<1x64x56xbf16, #tpu.memory_space<vmem>>, vector<1x64x56xbf16>
    %3 = vector.shape_cast %2 : vector<1x64x56xbf16> to vector<64x56xbf16>
    %cst = arith.constant dense<0.000000e+00> : vector<256x56xf32>
    %4 = tpu.matmul %1, %3, %cst {dimension_numbers = #tpu.dot_dimension_numbers<[1], [0], [0], [1], [0, 0, 1, 1], [], []>} : vector<256x64xbf16>, vector<64x56xbf16>, vector<256x56xf32> -> vector<256x56xf32>
    %5 = vector.extract_strided_slice %4 {offsets = [0, 0], sizes = [256, 7], strides = [1, 1]} : vector<256x56xf32> to vector<256x7xf32>
    %6 = vector.shape_cast %5 : vector<256x7xf32> to vector<4x64x7xf32>
    %c0_5 = arith.constant 0 : index
    %c0_6 = arith.constant 0 : index
    %c0_7 = arith.constant 0 : index
    %c0_8 = arith.constant 0 : index
    %7 = vector.load %arg3[%c0_5, %c0_6, %c0_7, %c0_8] : memref<1x8x7x64xf32, #tpu.memory_space<vmem>>, vector<1x1x7x64xf32>
    %8 = vector.shape_cast %7 : vector<1x1x7x64xf32> to vector<7x64xf32>
    %9 = vector.shape_cast %8 : vector<7x64xf32> to vector<1x7x64xf32>
    %10 = vector.shape_cast %9 : vector<1x7x64xf32> to vector<1x7x64xf32>
    %11 = vector.broadcast %10 : vector<1x7x64xf32> to vector<4x7x64xf32>
    %cst_9 = arith.constant dense<0.000000e+00> : vector<4x7x7xf32>
    %12 = tpu.matmul %11, %6, %cst_9 {dimension_numbers = #tpu.dot_dimension_numbers<[2], [1], [1], [2], [0, 0, 0, 1, 1, 2], [0], [0]>} : vector<4x7x64xf32>, vector<4x64x7xf32>, vector<4x7x7xf32> -> vector<4x7x7xf32>
    %c0_10 = arith.constant 0 : index
    %c0_11 = arith.constant 0 : index
    %c0_12 = arith.constant 0 : index
    %c0_13 = arith.constant 0 : index
    %13 = vector.load %arg5[%c0_10, %c0_11, %c0_12, %c0_13] : memref<8x4x7x7xf32, #tpu.memory_space<vmem>>, vector<1x4x7x7xf32>
    %14 = vector.shape_cast %13 : vector<1x4x7x7xf32> to vector<4x7x7xf32>
    %15 = vector.shape_cast %12 : vector<4x7x7xf32> to vector<1x4x7x7xf32>
    tpu.vector_store %arg5[%c0_10, %c0_11, %c0_12, %c0_13], %15 {strides = array<i32>} : memref<8x4x7x7xf32, #tpu.memory_space<vmem>>, vector<1x4x7x7xf32>,
    %16 = vector.extract_strided_slice %4 {offsets = [0, 7], sizes = [256, 7], strides = [1, 1]} : vector<256x56xf32> to vector<256x7xf32>
    %17 = vector.shape_cast %16 : vector<256x7xf32> to vector<4x64x7xf32>
    %c0_14 = arith.constant 0 : index
    %c1 = arith.constant 1 : index
    %c0_15 = arith.constant 0 : index
    %c0_16 = arith.constant 0 : index
    %18 = vector.load %arg3[%c0_14, %c1, %c0_15, %c0_16] : memref<1x8x7x64xf32, #tpu.memory_space<vmem>>, vector<1x1x7x64xf32>
    %19 = vector.shape_cast %18 : vector<1x1x7x64xf32> to vector<7x64xf32>
    %20 = vector.shape_cast %19 : vector<7x64xf32> to vector<1x7x64xf32>
    %21 = vector.shape_cast %20 : vector<1x7x64xf32> to vector<1x7x64xf32>
    %22 = vector.broadcast %21 : vector<1x7x64xf32> to vector<4x7x64xf32>
    %cst_17 = arith.constant dense<0.000000e+00> : vector<4x7x7xf32>
    %23 = tpu.matmul %22, %17, %cst_17 {dimension_numbers = #tpu.dot_dimension_numbers<[2], [1], [1], [2], [0, 0, 0, 1, 1, 2], [0], [0]>} : vector<4x7x64xf32>, vector<4x64x7xf32>, vector<4x7x7xf32> -> vector<4x7x7xf32>
    %c1_18 = arith.constant 1 : index
    %c0_19 = arith.constant 0 : index
    %c0_20 = arith.constant 0 : index
    %c0_21 = arith.constant 0 : index
    %24 = vector.load %arg5[%c1_18, %c0_19, %c0_20, %c0_21] : memref<8x4x7x7xf32, #tpu.memory_space<vmem>>, vector<1x4x7x7xf32>
    %25 = vector.shape_cast %24 : vector<1x4x7x7xf32> to vector<4x7x7xf32>
    %26 = vector.shape_cast %23 : vector<4x7x7xf32> to vector<1x4x7x7xf32>
    tpu.vector_store %arg5[%c1_18, %c0_19, %c0_20, %c0_21], %26 {strides = array<i32>} : memref<8x4x7x7xf32, #tpu.memory_space<vmem>>, vector<1x4x7x7xf32>,
    %27 = vector.extract_strided_slice %4 {offsets = [0, 14], sizes = [256, 7], strides = [1, 1]} : vector<256x56xf32> to vector<256x7xf32>
    %28 = vector.shape_cast %27 : vector<256x7xf32> to vector<4x64x7xf32>
    %c0_22 = arith.constant 0 : index
    %c2 = arith.constant 2 : index
    %c0_23 = arith.constant 0 : index
    %c0_24 = arith.constant 0 : index
    %29 = vector.load %arg3[%c0_22, %c2, %c0_23, %c0_24] : memref<1x8x7x64xf32, #tpu.memory_space<vmem>>, vector<1x1x7x64xf32>
    %30 = vector.shape_cast %29 : vector<1x1x7x64xf32> to vector<7x64xf32>
    %31 = vector.shape_cast %30 : vector<7x64xf32> to vector<1x7x64xf32>
    %32 = vector.shape_cast %31 : vector<1x7x64xf32> to vector<1x7x64xf32>
    %33 = vector.broadcast %32 : vector<1x7x64xf32> to vector<4x7x64xf32>
    %cst_25 = arith.constant dense<0.000000e+00> : vector<4x7x7xf32>
    %34 = tpu.matmul %33, %28, %cst_25 {dimension_numbers = #tpu.dot_dimension_numbers<[2], [1], [1], [2], [0, 0, 0, 1, 1, 2], [0], [0]>} : vector<4x7x64xf32>, vector<4x64x7xf32>, vector<4x7x7xf32> -> vector<4x7x7xf32>
    %c2_26 = arith.constant 2 : index
    %c0_27 = arith.constant 0 : index
    %c0_28 = arith.constant 0 : index
    %c0_29 = arith.constant 0 : index
    %35 = vector.load %arg5[%c2_26, %c0_27, %c0_28, %c0_29] : memref<8x4x7x7xf32, #tpu.memory_space<vmem>>, vector<1x4x7x7xf32>
    %36 = vector.shape_cast %35 : vector<1x4x7x7xf32> to vector<4x7x7xf32>
    %37 = vector.shape_cast %34 : vector<4x7x7xf32> to vector<1x4x7x7xf32>
    tpu.vector_store %arg5[%c2_26, %c0_27, %c0_28, %c0_29], %37 {strides = array<i32>} : memref<8x4x7x7xf32, #tpu.memory_space<vmem>>, vector<1x4x7x7xf32>,
    %38 = vector.extract_strided_slice %4 {offsets = [0, 21], sizes = [256, 7], strides = [1, 1]} : vector<256x56xf32> to vector<256x7xf32>
    %39 = vector.shape_cast %38 : vector<256x7xf32> to vector<4x64x7xf32>
    %c0_30 = arith.constant 0 : index
    %c3 = arith.constant 3 : index
    %c0_31 = arith.constant 0 : index
    %c0_32 = arith.constant 0 : index
    %40 = vector.load %arg3[%c0_30, %c3, %c0_31, %c0_32] : memref<1x8x7x64xf32, #tpu.memory_space<vmem>>, vector<1x1x7x64xf32>
    %41 = vector.shape_cast %40 : vector<1x1x7x64xf32> to vector<7x64xf32>
    %42 = vector.shape_cast %41 : vector<7x64xf32> to vector<1x7x64xf32>
    %43 = vector.shape_cast %42 : vector<1x7x64xf32> to vector<1x7x64xf32>
    %44 = vector.broadcast %43 : vector<1x7x64xf32> to vector<4x7x64xf32>
    %cst_33 = arith.constant dense<0.000000e+00> : vector<4x7x7xf32>
    %45 = tpu.matmul %44, %39, %cst_33 {dimension_numbers = #tpu.dot_dimension_numbers<[2], [1], [1], [2], [0, 0, 0, 1, 1, 2], [0], [0]>} : vector<4x7x64xf32>, vector<4x64x7xf32>, vector<4x7x7xf32> -> vector<4x7x7xf32>
    %c3_34 = arith.constant 3 : index
    %c0_35 = arith.constant 0 : index
    %c0_36 = arith.constant 0 : index
    %c0_37 = arith.constant 0 : index
    %46 = vector.load %arg5[%c3_34, %c0_35, %c0_36, %c0_37] : memref<8x4x7x7xf32, #tpu.memory_space<vmem>>, vector<1x4x7x7xf32>
    %47 = vector.shape_cast %46 : vector<1x4x7x7xf32> to vector<4x7x7xf32>
    %48 = vector.shape_cast %45 : vector<4x7x7xf32> to vector<1x4x7x7xf32>
    tpu.vector_store %arg5[%c3_34, %c0_35, %c0_36, %c0_37], %48 {strides = array<i32>} : memref<8x4x7x7xf32, #tpu.memory_space<vmem>>, vector<1x4x7x7xf32>,
    %49 = vector.extract_strided_slice %4 {offsets = [0, 28], sizes = [256, 7], strides = [1, 1]} : vector<256x56xf32> to vector<256x7xf32>
    %50 = vector.shape_cast %49 : vector<256x7xf32> to vector<4x64x7xf32>
    %c0_38 = arith.constant 0 : index
    %c4 = arith.constant 4 : index
    %c0_39 = arith.constant 0 : index
    %c0_40 = arith.constant 0 : index
    %51 = vector.load %arg3[%c0_38, %c4, %c0_39, %c0_40] : memref<1x8x7x64xf32, #tpu.memory_space<vmem>>, vector<1x1x7x64xf32>
    %52 = vector.shape_cast %51 : vector<1x1x7x64xf32> to vector<7x64xf32>
    %53 = vector.shape_cast %52 : vector<7x64xf32> to vector<1x7x64xf32>
    %54 = vector.shape_cast %53 : vector<1x7x64xf32> to vector<1x7x64xf32>
    %55 = vector.broadcast %54 : vector<1x7x64xf32> to vector<4x7x64xf32>
    %cst_41 = arith.constant dense<0.000000e+00> : vector<4x7x7xf32>
    %56 = tpu.matmul %55, %50, %cst_41 {dimension_numbers = #tpu.dot_dimension_numbers<[2], [1], [1], [2], [0, 0, 0, 1, 1, 2], [0], [0]>} : vector<4x7x64xf32>, vector<4x64x7xf32>, vector<4x7x7xf32> -> vector<4x7x7xf32>
    %c4_42 = arith.constant 4 : index
    %c0_43 = arith.constant 0 : index
    %c0_44 = arith.constant 0 : index
    %c0_45 = arith.constant 0 : index
    %57 = vector.load %arg5[%c4_42, %c0_43, %c0_44, %c0_45] : memref<8x4x7x7xf32, #tpu.memory_space<vmem>>, vector<1x4x7x7xf32>
    %58 = vector.shape_cast %57 : vector<1x4x7x7xf32> to vector<4x7x7xf32>
    %59 = vector.shape_cast %56 : vector<4x7x7xf32> to vector<1x4x7x7xf32>
    tpu.vector_store %arg5[%c4_42, %c0_43, %c0_44, %c0_45], %59 {strides = array<i32>} : memref<8x4x7x7xf32, #tpu.memory_space<vmem>>, vector<1x4x7x7xf32>,
    %60 = vector.extract_strided_slice %4 {offsets = [0, 35], sizes = [256, 7], strides = [1, 1]} : vector<256x56xf32> to vector<256x7xf32>
    %61 = vector.shape_cast %60 : vector<256x7xf32> to vector<4x64x7xf32>
    %c0_46 = arith.constant 0 : index
    %c5 = arith.constant 5 : index
    %c0_47 = arith.constant 0 : index
    %c0_48 = arith.constant 0 : index
    %62 = vector.load %arg3[%c0_46, %c5, %c0_47, %c0_48] : memref<1x8x7x64xf32, #tpu.memory_space<vmem>>, vector<1x1x7x64xf32>
    %63 = vector.shape_cast %62 : vector<1x1x7x64xf32> to vector<7x64xf32>
    %64 = vector.shape_cast %63 : vector<7x64xf32> to vector<1x7x64xf32>
    %65 = vector.shape_cast %64 : vector<1x7x64xf32> to vector<1x7x64xf32>
    %66 = vector.broadcast %65 : vector<1x7x64xf32> to vector<4x7x64xf32>
    %cst_49 = arith.constant dense<0.000000e+00> : vector<4x7x7xf32>
    %67 = tpu.matmul %66, %61, %cst_49 {dimension_numbers = #tpu.dot_dimension_numbers<[2], [1], [1], [2], [0, 0, 0, 1, 1, 2], [0], [0]>} : vector<4x7x64xf32>, vector<4x64x7xf32>, vector<4x7x7xf32> -> vector<4x7x7xf32>
    %c5_50 = arith.constant 5 : index
    %c0_51 = arith.constant 0 : index
    %c0_52 = arith.constant 0 : index
    %c0_53 = arith.constant 0 : index
    %68 = vector.load %arg5[%c5_50, %c0_51, %c0_52, %c0_53] : memref<8x4x7x7xf32, #tpu.memory_space<vmem>>, vector<1x4x7x7xf32>
    %69 = vector.shape_cast %68 : vector<1x4x7x7xf32> to vector<4x7x7xf32>
    %70 = vector.shape_cast %67 : vector<4x7x7xf32> to vector<1x4x7x7xf32>
    tpu.vector_store %arg5[%c5_50, %c0_51, %c0_52, %c0_53], %70 {strides = array<i32>} : memref<8x4x7x7xf32, #tpu.memory_space<vmem>>, vector<1x4x7x7xf32>,
    %71 = vector.extract_strided_slice %4 {offsets = [0, 42], sizes = [256, 7], strides = [1, 1]} : vector<256x56xf32> to vector<256x7xf32>
    %72 = vector.shape_cast %71 : vector<256x7xf32> to vector<4x64x7xf32>
    %c0_54 = arith.constant 0 : index
    %c6 = arith.constant 6 : index
    %c0_55 = arith.constant 0 : index
    %c0_56 = arith.constant 0 : index
    %73 = vector.load %arg3[%c0_54, %c6, %c0_55, %c0_56] : memref<1x8x7x64xf32, #tpu.memory_space<vmem>>, vector<1x1x7x64xf32>
    %74 = vector.shape_cast %73 : vector<1x1x7x64xf32> to vector<7x64xf32>
    %75 = vector.shape_cast %74 : vector<7x64xf32> to vector<1x7x64xf32>
    %76 = vector.shape_cast %75 : vector<1x7x64xf32> to vector<1x7x64xf32>
    %77 = vector.broadcast %76 : vector<1x7x64xf32> to vector<4x7x64xf32>
    %cst_57 = arith.constant dense<0.000000e+00> : vector<4x7x7xf32>
    %78 = tpu.matmul %77, %72, %cst_57 {dimension_numbers = #tpu.dot_dimension_numbers<[2], [1], [1], [2], [0, 0, 0, 1, 1, 2], [0], [0]>} : vector<4x7x64xf32>, vector<4x64x7xf32>, vector<4x7x7xf32> -> vector<4x7x7xf32>
    %c6_58 = arith.constant 6 : index
    %c0_59 = arith.constant 0 : index
    %c0_60 = arith.constant 0 : index
    %c0_61 = arith.constant 0 : index
    %79 = vector.load %arg5[%c6_58, %c0_59, %c0_60, %c0_61] : memref<8x4x7x7xf32, #tpu.memory_space<vmem>>, vector<1x4x7x7xf32>
    %80 = vector.shape_cast %79 : vector<1x4x7x7xf32> to vector<4x7x7xf32>
    %81 = vector.shape_cast %78 : vector<4x7x7xf32> to vector<1x4x7x7xf32>
    tpu.vector_store %arg5[%c6_58, %c0_59, %c0_60, %c0_61], %81 {strides = array<i32>} : memref<8x4x7x7xf32, #tpu.memory_space<vmem>>, vector<1x4x7x7xf32>,
    %82 = vector.extract_strided_slice %4 {offsets = [0, 49], sizes = [256, 7], strides = [1, 1]} : vector<256x56xf32> to vector<256x7xf32>
    %83 = vector.shape_cast %82 : vector<256x7xf32> to vector<4x64x7xf32>
    %c0_62 = arith.constant 0 : index
    %c7 = arith.constant 7 : index
    %c0_63 = arith.constant 0 : index
    %c0_64 = arith.constant 0 : index
    %84 = vector.load %arg3[%c0_62, %c7, %c0_63, %c0_64] : memref<1x8x7x64xf32, #tpu.memory_space<vmem>>, vector<1x1x7x64xf32>
    %85 = vector.shape_cast %84 : vector<1x1x7x64xf32> to vector<7x64xf32>
    %86 = vector.shape_cast %85 : vector<7x64xf32> to vector<1x7x64xf32>
    %87 = vector.shape_cast %86 : vector<1x7x64xf32> to vector<1x7x64xf32>
    %88 = vector.broadcast %87 : vector<1x7x64xf32> to vector<4x7x64xf32>
    %cst_65 = arith.constant dense<0.000000e+00> : vector<4x7x7xf32>
    %89 = tpu.matmul %88, %83, %cst_65 {dimension_numbers = #tpu.dot_dimension_numbers<[2], [1], [1], [2], [0, 0, 0, 1, 1, 2], [0], [0]>} : vector<4x7x64xf32>, vector<4x64x7xf32>, vector<4x7x7xf32> -> vector<4x7x7xf32>
    %c7_66 = arith.constant 7 : index
    %c0_67 = arith.constant 0 : index
    %c0_68 = arith.constant 0 : index
    %c0_69 = arith.constant 0 : index
    %90 = vector.load %arg5[%c7_66, %c0_67, %c0_68, %c0_69] : memref<8x4x7x7xf32, #tpu.memory_space<vmem>>, vector<1x4x7x7xf32>
    %91 = vector.shape_cast %90 : vector<1x4x7x7xf32> to vector<4x7x7xf32>
    %92 = vector.shape_cast %89 : vector<4x7x7xf32> to vector<1x4x7x7xf32>
    tpu.vector_store %arg5[%c7_66, %c0_67, %c0_68, %c0_69], %92 {strides = array<i32>} : memref<8x4x7x7xf32, #tpu.memory_space<vmem>>, vector<1x4x7x7xf32>,
    return
  }
  func.func @transform_0(%arg0: i32, %arg1: memref<5xi32, #tpu.memory_space<smem>>) -> (i32, i32, i32) {
    %0 = arith.index_cast %arg0 : i32 to index
    %1 = memref.load %arg1[%0] : memref<5xi32, #tpu.memory_space<smem>>
    %c0_i32 = arith.constant 0 : i32
    %c0_i32_0 = arith.constant 0 : i32
    %c0_i32_1 = arith.constant 0 : i32
    return %1, %c0_i32, %c0_i32_0 : i32, i32, i32
  }
  func.func @transform_1(%arg0: i32, %arg1: memref<5xi32, #tpu.memory_space<smem>>) -> (i32, i32, i32, i32) {
    %c0_i32 = arith.constant 0 : i32
    %c0_i32_0 = arith.constant 0 : i32
    %c0_i32_1 = arith.constant 0 : i32
    %c0_i32_2 = arith.constant 0 : i32
    return %arg0, %c0_i32, %c0_i32_0, %c0_i32_1 : i32, i32, i32, i32
  }
  func.func @transform_2(%arg0: i32, %arg1: memref<5xi32, #tpu.memory_space<smem>>) -> (i32, i32, i32) {
    %c0_i32 = arith.constant 0 : i32
    %c0_i32_0 = arith.constant 0 : i32
    %c0_i32_1 = arith.constant 0 : i32
    return %arg0, %c0_i32, %c0_i32_0 : i32, i32, i32
  }
  func.func @transform_3(%arg0: i32, %arg1: memref<5xi32, #tpu.memory_space<smem>>) -> (i32, i32, i32, i32) {
    %c0_i32 = arith.constant 0 : i32
    %c0_i32_0 = arith.constant 0 : i32
    %c0_i32_1 = arith.constant 0 : i32
    %c0_i32_2 = arith.constant 0 : i32
    return %arg0, %c0_i32, %c0_i32_0, %c0_i32_1 : i32, i32, i32, i32
  }
}

</mosaic_0001>

<bundles_post_ra>
// kernel: tpu_custom_call.1
= control target key start
LH: loop header
LB: loop body
LE: loop exit
PB: predicated region body
PF: predicated region fallthrough
CT: control target
= control target key end

     0   :  { %s6491_s0 = inlined_call_operand.vmem [shape: s32[5], index: 0, kind: input, shape index: {}]   ;;  %s6492_s1 = inlined_call_operand.vmem [shape: bf16[4,256,64], index: 1, kind: input, shape index: {}]   ;;  %s6493_s2 = inlined_call_operand.vmem [shape: f32[5,8,7,64], index: 2, kind: input, shape index: {}]   ;;  %s6494_s3 = inlined_call_operand.vmem [shape: bf16[5,64,56], index: 3, kind: input, shape index: {}]   ;;  %s6495_s4 = inlined_call_operand.vmem [shape: f32[40,4,7,7], index: 4, kind: output, shape index: {}]  }
   0x1   :  { %s9_s17 = sshll.u32 %s6491_s0, 4  ;;  %s10_s17 = int_to_ptr.vmem [resolvable:$true] %s9_s17 }
   0x2   :  { %s5750_s18 = scalar_lea.vmem %s10_s17, 16  ;;  %p5755_p1 = scmp.lt.s32.totalorder %s10_s17, %s10_s17 }
   0x3   :  { %p5751_p0 = scmp.ne.s32.totalorder %s10_s17, %s5750_s18  ;;  %p5756_p2 = scmp.lt.s32.totalorder %s5750_s18, %s5750_s18 }
   0x5   :  { %p5757_p3 = por %p5756_p2, %p5755_p1 }
   0x7   :  { %p5758_p4 = pnand %p5757_p3, %p5751_p0 }
   0x9   :  { %5761 = shalt.err (!%p5758_p4)  }
   0xa   :  { %s5772_s19 = smov [#allocation3]  }
   0xb   :  { %12 = dma.vmem_to_smem %s10_s17, 16, %s5772_s19, [#allocation2] }
   0xc   :  { %5766 = dma.done.wait [#allocation2], 16 }
   0xd   :  { %5767 = vsyncadd [#allocation2], 4294967280 }
   0xe   :  { %14 = sfence }
   0xf   :  { %s5811_s20 = smov 0  }
  0x10 LB: > { %s5817_s0 = sadd.s32 4294967295, %s5770_s20   ;;  %p3692_p5 = scmp.ge.s32.totalorder %s5770_s20, 1  ;;  %s5770_s20 = sphi %s5811_s20, %s20_s20  }
  0x11   : > { %p168_p6 = scmp.lt.s32.totalorder %s5770_s20, 6 }
  0x13   : > { %p169_p7 = pnand %p3692_p5, %p168_p6 }
  0x14   : > { %p211_p8 = scmp.lt.s32.totalorder (!%p169_p7), %s5817_s0, 4  ;;  %s204_s21 = sld [smem:[#allocation3 + %s5817_s0]] (!%p169_p7)  ;;  %vm373_vm0 = vcmask (!%p169_p7), 523264   ;;  %v5773_v20 = vmov (!%p169_p7), 0.0|0.0   ;;  %vm5774_vm1 = vmmov (!%p169_p7), 0   ;;  %v5775_v21 = vmov (!%p169_p7), 0.0  }
  0x15   : > { %172 = sbr.rel (%p169_p7) target bundleno = 853 (0x355), region = 32  ;;  %4767 = vmatprep.subr.bf16.mxu1 (!%p169_p7), %v5773_v20  ;;  %4175 = vmatprep.mubr.msk.f32.mxu1 (!%p169_p7), %vm5774_vm1, %v5775_v21  ;;  %s5776_s5 = smov (!%p169_p7), 121   ;;  %vm867_vm2 = vcmask (!%p169_p7), 55296  }
  0x16   : > { %s5777_s10 = smov (!%p169_p7), 114   ;;  %s5778_s11 = smov (!%p169_p7), 107  }
  0x17   : > { %s5779_s12 = smov (!%p169_p7), 100   ;;  %s5780_s13 = smov (!%p169_p7), 93  }
  0x18   : > { %s5781_s14 = smov (!%p169_p7), 86   ;;  %s5782_s15 = smov (!%p169_p7), 79  }
  0x19   : > { %s3699_s16 = sshll.u32 (!%p169_p7), %s5817_s0, 3 }
  0x1a   : > { %p205_p9 = scmp.lt.s32.totalorder (!%p169_p7), %s204_s21, 3  ;;  %p6216_p10 = scmp.lt.s32.totalorder (!%p169_p7), %s3699_s16, 39 }
  0x1c   : > { %s5824_s22 = scalar_select %p211_p8, %s5817_s0, 4 }
  0x1d   : > { %s6498_s21 = smov (!%p205_p9, %s204_s21), 3  ;;  %s6500_s16 = smov (!%p6216_p10, %s3699_s16), 39 }
  0x1e   : > { %s3809_s23 = sshll.u32 %s5824_s22, 5  ;;  %s3807_s27 = sshll.u32 %s6498_s21, 7 }
  0x1f   : > { %s220_s26 = scalar_lea.vmem %s6494_s3, %s3809_s23  ;;  %s5833_s30 = scalar_lea.vmem %s6492_s1, %s3807_s27 }
  0x20   : > { %v5730_v0 = vld [vmem:[%s220_s26] sm:$0xff]   ;;  %v5731_v1 = vld [vmem:[%s220_s26 + $0x8] sm:$0xff]   ;;  %v5732_v2 = vld [vmem:[%s220_s26 + $0x10] sm:$0xff]   ;;  %s3808_s6 = sshll.u32 %s5824_s22, 6  ;;  %s3810_s18 = sshll.u32 %s6500_s16, 5 }
  0x21   : > { %4119 = vmatprep.subr.bf16.mxu0 %v5730_v0  ;;  %v5734_v3 = vld [vmem:[%s5833_s30] sm:$0xff]   ;;  %v5733_v4 = vld [vmem:[%s220_s26 + $0x18] sm:$0xff]   ;;  %v5735_v5 = vld [vmem:[%s5833_s30 + $0x8] sm:$0xff]   ;;  %s5892_s9 = scalar_lea.vmem %s6493_s2, %s3808_s6  ;;  %s6250_s21 = scalar_lea.vmem %s6495_s4, %s3810_s18 }
  0x22   : > { %4120 = vmatpush3.bf16.msra.mxu0 %v5730_v0  ;;  %4127 = vmatprep.mubr.msk.bf16.mxu0 %vm373_vm0, %v5734_v3  ;;  %v5736_v6 = vld [vmem:[%s5833_s30 + $0x10] sm:$0xff]   ;;  %v5737_v7 = vld [vmem:[%s5833_s30 + $0x18] sm:$0xff]   ;;  %v5738_v8 = vld [vmem:[%s5833_s30 + $0x20] sm:$0xff]  }
  0x23   : > { %4121 = vmatprep.subr.bf16.mxu0 %v5731_v1  ;;  %v5739_v9 = vld [vmem:[%s5833_s30 + $0x28] sm:$0xff]   ;;  %v5740_v10 = vld [vmem:[%s5833_s30 + $0x30] sm:$0xff]   ;;  %v5741_v11 = vld [vmem:[%s5833_s30 + $0x38] sm:$0xff]  }
  0x24   : > { %v5742_v12 = vld [vmem:[%s5833_s30 + $0x40] sm:$0xff]   ;;  %v5743_v13 = vld [vmem:[%s5833_s30 + $0x48] sm:$0xff]   ;;  %v5744_v14 = vld [vmem:[%s5833_s30 + $0x50] sm:$0xff]  }
  0x25   : > { %v5745_v15 = vld [vmem:[%s5833_s30 + $0x58] sm:$0xff]   ;;  %v5746_v16 = vld [vmem:[%s5833_s30 + $0x60] sm:$0xff]   ;;  %v5747_v17 = vld [vmem:[%s5833_s30 + $0x68] sm:$0xff]  }
  0x26   : > { %4122 = vmatpush3.bf16.msra.mxu0 %v5731_v1  ;;  %v5748_v18 = vld [vmem:[%s5833_s30 + $0x70] sm:$0xff]   ;;  %v5749_v19 = vld [vmem:[%s5833_s30 + $0x78] sm:$0xff]   ;;  %v5895_v41 = vld [vmem:[%s5892_s9] sm:$0x7f] }
  0x27   : > { %4123 = vmatprep.subr.bf16.mxu0 %v5732_v2 }
  0x2a   : > { %4124 = vmatpush3.bf16.msra.mxu0 %v5732_v2 }
  0x2b   : > { %4125 = vmatprep.subr.bf16.mxu0 %v5733_v4 }
  0x2e   : > { %4126 = vmatpush3.bf16.msra.mxu0 %v5733_v4 }
  0x2f   : > { %4815 = vmatprep.subr.bf16.mxu0 %v5773_v20 }
  0x31   : > { %4128 = vmatmul.mubr.msk.bf16.vlgmr.msra.gmra.mrb[0].mxu0 %vm373_vm0, %v5735_v5 }
  0x32   : > { %4131 = vmatprep.mubr.msk.bf16.mxu0 %vm373_vm0, %v5736_v6 }
  0x39   : > { %4132 = vmatmul.mubr.msk.bf16.gmra.mrb[4].mxu0 %vm373_vm0, %v5737_v7 }
  0x3a   : > { %4135 = vmatprep.mubr.msk.bf16.mxu0 %vm373_vm0, %v5738_v8 }
  0x41   : > { %4136 = vmatmul.mubr.msk.bf16.gmra.mrb[8].mxu0 %vm373_vm0, %v5739_v9 }
  0x42   : > { %4139 = vmatprep.mubr.msk.bf16.mxu0 %vm373_vm0, %v5740_v10 }
  0x49   : > { %4140 = vmatmul.mubr.msk.bf16.gmra.mrb[12].mxu0 %vm373_vm0, %v5741_v11 }
  0x4a   : > { %4143 = vmatprep.mubr.msk.bf16.mxu0 %vm373_vm0, %v5742_v12 }
  0x51   : > { %4144 = vmatmul.mubr.msk.bf16.gmra.mrb[16].mxu0 %vm373_vm0, %v5743_v13 }
  0x52   : > { %4147 = vmatprep.mubr.msk.bf16.mxu0 %vm373_vm0, %v5744_v14 }
  0x59   : > { %4148 = vmatmul.mubr.msk.bf16.gmra.mrb[20].mxu0 %vm373_vm0, %v5745_v15 }
  0x5a   : > { %4151 = vmatprep.mubr.msk.bf16.mxu0 %vm373_vm0, %v5746_v16 }
  0x61   : > { %4152 = vmatmul.mubr.msk.bf16.gmra.mrb[24].mxu0 %vm373_vm0, %v5747_v17 }
  0x62   : > { %4155 = vmatprep.mubr.msk.bf16.mxu0 %vm373_vm0, %v5748_v18 }
  0x69   : > { %4156 = vmatmul.mubr.msk.bf16.gmra.mrb[28].mxu0 %vm373_vm0, %v5749_v19 }
  0x6a   : > { %4251 = vmatprep.mubr.msk.f32.mxu0 %vm5774_vm1, %v5775_v21 }
 0x104   : > { %v4129_v22 = vpop.f32.mrb[0].mxu0 }
 0x105   : > { %v456_v23 = vpop.f32.mrb[1].mxu0 }
 0x106   : > { %v4130_v24 = vpop.f32.mrb[2].mxu0 }
 0x107   : > { %v459_v25 = vpop.f32.mrb[3].mxu0  ;;  %v5873_v26 = vpack.i.bf16 %v4130_v24, %v4129_v22  ;;  %v4771_v27 = vpack.c.bf16 %v4130_v24, %v4129_v22 }
 0x108   : > { %v5875_v28 = vpack.i.bf16 %v459_v25, %v456_v23  ;;  %v4768_v29 = vpack.c.bf16 %v459_v25, %v456_v23 }
 0x109   : > { %5181 = vrot.lane.b32.xlu1 %v5873_v26, %s5776_s5 }
 0x10a   : > { %5171 = vrot.lane.b32.xlu0 %v5875_v28, %s5776_s5  ;;  %4769 = vmatpush3.bf16.msra.mxu1 %v4768_v29 }
 0x10b   : > { %4770 = vmatprep.subr.bf16.mxu1 %v5773_v20 }
 0x10c   : > { %v4133_v30 = vpop.f32.mrb[4].mxu0 }
 0x10d   : > { %v472_v31 = vpop.f32.mrb[5].mxu0 }
 0x10e   : > { %4772 = vmatpush3.bf16.msra.mxu1 %v4771_v27  ;;  %v4134_v32 = vpop.f32.mrb[6].mxu0 }
 0x10f   : > { %v475_v33 = vpop.f32.mrb[7].mxu0  ;;  %4773 = vmatprep.subr.bf16.mxu1 %v5773_v20  ;;  %v4777_v34 = vpack.c.bf16 %v4134_v32, %v4133_v30  ;;  %v5883_v35 = vpack.i.bf16 %v4134_v32, %v4133_v30 }
 0x110   : > { %v4774_v36 = vpack.c.bf16 %v475_v33, %v472_v31  ;;  %v5885_v37 = vpack.i.bf16 %v475_v33, %v472_v31 }
 0x112   : > { %4775 = vmatpush3.bf16.msra.mxu1 %v4774_v36 }
 0x113   : > { %4776 = vmatprep.subr.bf16.mxu1 %v5773_v20 }
 0x114   : > { %v4137_v38 = vpop.f32.mrb[8].mxu0 }
 0x115   : > { %v488_v39 = vpop.f32.mrb[9].mxu0 }
 0x116   : > { %v4138_v40 = vpop.f32.mrb[10].mxu0  ;;  %4778 = vmatpush3.bf16.msra.mxu1 %v4777_v34 }
 0x117   : > { %v491_v42 = vpop.f32.mrb[11].mxu0  ;;  %4779 = vmatprep.subr.bf16.mxu1 %v5773_v20  ;;  %v5898_v43 = vpack.i.bf16 %v4138_v40, %v4137_v38  ;;  %v4783_v44 = vpack.c.bf16 %v4138_v40, %v4137_v38 }
 0x118   : > { %v5900_v45 = vpack.i.bf16 %v491_v42, %v488_v39  ;;  %v4780_v46 = vpack.c.bf16 %v491_v42, %v488_v39 }
 0x119   : > { %4176 = vmatmul.mubr.msk.f32.vlgmr.msra.gmra.mrb[0].mxu1 %vm373_vm0, %v5895_v41  ;;  %5186 = vrot.lane.b32.xlu1 %v5898_v43, %s5776_s5 }
 0x11a   : > { %5176 = vrot.lane.b32.xlu0 %v5900_v45, %s5776_s5  ;;  %4781 = vmatpush3.bf16.msra.mxu1 %v4780_v46 }
 0x11b   : > { %4782 = vmatprep.subr.bf16.mxu1 %v5773_v20  ;;  %4194 = vmatprep.mubr.msk.f32.mxu1 %vm5774_vm1, %v5775_v21 }
 0x11c   : > { %v4141_v47 = vpop.f32.mrb[12].mxu0 }
 0x11d   : > { %v504_v48 = vpop.f32.mrb[13].mxu0 }
 0x11e   : > { %5191 = vrot.lane.b32.xlu0 %v5885_v37, %s5776_s5  ;;  %v4142_v49 = vpop.f32.mrb[14].mxu0  ;;  %4784 = vmatpush3.bf16.msra.mxu1 %v4783_v44 }
 0x11f   : > { %v507_v50 = vpop.f32.mrb[15].mxu0  ;;  %4785 = vmatprep.subr.bf16.mxu1 %v5773_v20  ;;  %v5914_v51 = vpack.i.bf16 %v4142_v49, %v4141_v47  ;;  %v4789_v52 = vpack.c.bf16 %v4142_v49, %v4141_v47 }
 0x120   : > { %v5916_v53 = vpack.i.bf16 %v507_v50, %v504_v48  ;;  %v4786_v54 = vpack.c.bf16 %v507_v50, %v504_v48 }
 0x122   : > { %5196 = vrot.lane.b32.xlu0 %v5883_v35, %s5776_s5  ;;  %5201 = vrot.lane.b32.xlu1 %v5916_v53, %s5776_s5 }
 0x123   : > { %4787 = vmatpush3.bf16.msra.mxu1 %v4786_v54 }
 0x124   : > { %v4145_v55 = vpop.f32.mrb[16].mxu0  ;;  %4788 = vmatprep.subr.bf16.mxu1 %v5773_v20 }
 0x125   : > { %v520_v56 = vpop.f32.mrb[17].mxu0 }
 0x126   : > { %v4146_v57 = vpop.f32.mrb[18].mxu0  ;;  %5206 = vrot.lane.b32.xlu1 %v5914_v51, %s5776_s5 }
 0x127   : > { %v523_v58 = vpop.f32.mrb[19].mxu0  ;;  %v5925_v59 = vpack.i.bf16 %v4146_v57, %v4145_v55  ;;  %4790 = vmatpush3.bf16.msra.mxu1 %v4789_v52  ;;  %v4795_v60 = vpack.c.bf16 %v4146_v57, %v4145_v55 }
 0x128   : > { %v5927_v61 = vpack.i.bf16 %v523_v58, %v520_v56  ;;  %4791 = vmatprep.subr.bf16.mxu1 %v5773_v20  ;;  %v4792_v62 = vpack.c.bf16 %v523_v58, %v520_v56 }
 0x12a   : > { %5211 = vrot.lane.b32.xlu0 %v5927_v61, %s5776_s5  ;;  %4195 = vmatmul.mubr.msk.f32.vlgmr.msra.gmra.mrb[2].mxu1 %vm373_vm0, %v5895_v41 }
 0x12b   : > { %4793 = vmatpush3.bf16.msra.mxu1 %v4792_v62  ;;  %4213 = vmatprep.mubr.msk.f32.mxu1 %vm5774_vm1, %v5775_v21 }
 0x12c   : > { %v4149_v63 = vpop.f32.mrb[20].mxu0  ;;  %4794 = vmatprep.subr.bf16.mxu1 %v5773_v20 }
 0x12d   : > { %v536_v0 = vpop.f32.mrb[21].mxu0 }
 0x12e   : > { %5216 = vrot.lane.b32.xlu0 %v5925_v59, %s5776_s5  ;;  %v4150_v1 = vpop.f32.mrb[22].mxu0 }
 0x12f   : > { %v539_v2 = vpop.f32.mrb[23].mxu0  ;;  %v5939_v3 = vpack.i.bf16 %v4150_v1, %v4149_v63  ;;  %4796 = vmatpush3.bf16.msra.mxu1 %v4795_v60  ;;  %v4801_v4 = vpack.c.bf16 %v4150_v1, %v4149_v63 }
 0x130   : > { %v5941_v5 = vpack.i.bf16 %v539_v2, %v536_v0  ;;  %4797 = vmatprep.subr.bf16.mxu1 %v5773_v20  ;;  %v4798_v6 = vpack.c.bf16 %v539_v2, %v536_v0  ;;  %v6072_v0 = vld [vmem:[%s5892_s9 + $0x8] sm:$0x7f] }
 0x132   : > { %5231 = vrot.lane.b32.xlu0 %v5941_v5, %s5776_s5 }
 0x133   : > { %4799 = vmatpush3.bf16.msra.mxu1 %v4798_v6 }
 0x134   : > { %v4153_v7 = vpop.f32.mrb[24].mxu0  ;;  %4800 = vmatprep.subr.bf16.mxu1 %v5773_v20 }
 0x135   : > { %v552_v8 = vpop.f32.mrb[25].mxu0 }
 0x136   : > { %5236 = vrot.lane.b32.xlu0 %v5939_v3, %s5776_s5  ;;  %v4154_v9 = vpop.f32.mrb[26].mxu0 }
 0x137   : > { %v555_v10 = vpop.f32.mrb[27].mxu0  ;;  %v5949_v11 = vpack.i.bf16 %v4154_v9, %v4153_v7  ;;  %4802 = vmatpush3.bf16.msra.mxu1 %v4801_v4  ;;  %v4807_v12 = vpack.c.bf16 %v4154_v9, %v4153_v7 }
 0x138   : > { %v5951_v13 = vpack.i.bf16 %v555_v10, %v552_v8  ;;  %4803 = vmatprep.subr.bf16.mxu1 %v5773_v20  ;;  %v4804_v14 = vpack.c.bf16 %v555_v10, %v552_v8 }
 0x13a   : > { %5251 = vrot.lane.b32.xlu0 %v5875_v28, %s5777_s10  ;;  %5221 = vrot.lane.b32.xlu1 %v5951_v13, %s5776_s5 }
 0x13b   : > { %4214 = vmatmul.mubr.msk.f32.vlgmr.msra.gmra.mrb[4].mxu1 %vm373_vm0, %v5895_v41 }
 0x13c   : > { %v4157_v15 = vpop.f32.mrb[28].mxu0  ;;  %4805 = vmatpush3.bf16.msra.mxu1 %v4804_v14  ;;  %4232 = vmatprep.mubr.msk.f32.mxu1 %vm5774_vm1, %v5775_v21 }
 0x13d   : > { %v568_v16 = vpop.f32.mrb[29].mxu0  ;;  %4806 = vmatprep.subr.bf16.mxu1 %v5773_v20 }
 0x13e   : > { %5261 = vrot.lane.b32.xlu0 %v5873_v26, %s5777_s10  ;;  %5226 = vrot.lane.b32.xlu1 %v5949_v11, %s5776_s5  ;;  %v4158_v17 = vpop.f32.mrb[30].mxu0 }
 0x13f   : > { %v571_v18 = vpop.f32.mrb[31].mxu0  ;;  %v5967_v19 = vpack.i.bf16 %v4158_v17, %v4157_v15  ;;  %v4813_v22 = vpack.c.bf16 %v4158_v17, %v4157_v15 }
 0x140   : > { %v5969_v23 = vpack.i.bf16 %v571_v18, %v568_v16  ;;  %4808 = vmatpush3.bf16.msra.mxu1 %v4807_v12  ;;  %v4810_v24 = vpack.c.bf16 %v571_v18, %v568_v16 }
 0x141   : > { %4809 = vmatprep.subr.bf16.mxu1 %v5773_v20 }
 0x142   : > { %5271 = vrot.lane.b32.xlu0 %v5885_v37, %s5777_s10  ;;  %5241 = vrot.lane.b32.xlu1 %v5969_v23, %s5776_s5 }
 0x144   : > { %4811 = vmatpush3.bf16.msra.mxu1 %v4810_v24 }
 0x145   : > { %4812 = vmatprep.subr.bf16.mxu1 %v5773_v20 }
 0x146   : > { %5281 = vrot.lane.b32.xlu0 %v5883_v35, %s5777_s10  ;;  %5246 = vrot.lane.b32.xlu1 %v5967_v19, %s5776_s5 }
 0x148   : > { %4814 = vmatpush3.bf16.msra.mxu1 %v4813_v22 }
 0x149   : > { %4827 = vmatprep.subr.bf16.mxu1 %v5773_v20 }
 0x14a   : > { %5291 = vrot.lane.b32.xlu0 %v5927_v61, %s5777_s10  ;;  %5256 = vrot.lane.b32.xlu1 %v5900_v45, %s5777_s10 }
 0x14b   : > { %4233 = vmatmul.mubr.msk.f32.vlgmr.msra.gmra.mrb[6].mxu1 %vm373_vm0, %v5895_v41 }
 0x14c   : > { %4270 = vmatprep.mubr.msk.f32.mxu1 %vm5774_vm1, %v5775_v21 }
 0x14e   : > { %5301 = vrot.lane.b32.xlu0 %v5925_v59, %s5777_s10  ;;  %5266 = vrot.lane.b32.xlu1 %v5898_v43, %s5777_s10 }
 0x152   : > { %5311 = vrot.lane.b32.xlu0 %v5941_v5, %s5777_s10  ;;  %5276 = vrot.lane.b32.xlu1 %v5916_v53, %s5777_s10 }
 0x156   : > { %5316 = vrot.lane.b32.xlu0 %v5939_v3, %s5777_s10  ;;  %5286 = vrot.lane.b32.xlu1 %v5914_v51, %s5777_s10 }
 0x15a   : > { %5331 = vrot.lane.b32.xlu0 %v5875_v28, %s5778_s11  ;;  %5296 = vrot.lane.b32.xlu1 %v5951_v13, %s5777_s10 }
 0x15e   : > { %5341 = vrot.lane.b32.xlu0 %v5873_v26, %s5778_s11  ;;  %5306 = vrot.lane.b32.xlu1 %v5949_v11, %s5777_s10 }
 0x162   : > { %5351 = vrot.lane.b32.xlu0 %v5885_v37, %s5778_s11  ;;  %5321 = vrot.lane.b32.xlu1 %v5969_v23, %s5777_s10 }
 0x166   : > { %5361 = vrot.lane.b32.xlu0 %v5883_v35, %s5778_s11  ;;  %5326 = vrot.lane.b32.xlu1 %v5967_v19, %s5777_s10 }
 0x16a   : > { %5371 = vrot.lane.b32.xlu0 %v5927_v61, %s5778_s11  ;;  %5336 = vrot.lane.b32.xlu1 %v5900_v45, %s5778_s11 }
 0x16e   : > { %5381 = vrot.lane.b32.xlu0 %v5925_v59, %s5778_s11  ;;  %5346 = vrot.lane.b32.xlu1 %v5898_v43, %s5778_s11 }
 0x172   : > { %5391 = vrot.lane.b32.xlu0 %v5941_v5, %s5778_s11  ;;  %5356 = vrot.lane.b32.xlu1 %v5916_v53, %s5778_s11 }
 0x176   : > { %5396 = vrot.lane.b32.xlu0 %v5939_v3, %s5778_s11  ;;  %5366 = vrot.lane.b32.xlu1 %v5914_v51, %s5778_s11 }
 0x17a   : > { %5411 = vrot.lane.b32.xlu0 %v5875_v28, %s5779_s12  ;;  %5376 = vrot.lane.b32.xlu1 %v5951_v13, %s5778_s11 }
 0x17b   : > { %v5182_v25 = vpop.permute.xlu1 %5181 }
 0x17c   : > { %v5172_v27 = vpop.permute.xlu0 %5171  ;;  %v5184_v31 = vunpack.i.h.bf16 %v5182_v25  ;;  %v5183_v32 = vunpack.i.l.bf16 %v5182_v25 }
 0x17d   : > { %v5174_v29 = vunpack.i.h.bf16 %v5172_v27  ;;  %v5173_v30 = vunpack.i.l.bf16 %v5172_v27 }
 0x17e   : > { %5421 = vrot.lane.b32.xlu0 %v5873_v26, %s5779_s12  ;;  %5386 = vrot.lane.b32.xlu1 %v5949_v11, %s5778_s11  ;;  %v4819_v34 = vpack.c.bf16 %v5184_v31, %v5183_v32 }
 0x17f   : > { %v4816_v33 = vpack.c.bf16 %v5174_v29, %v5173_v30 }
 0x181   : > { %4817 = vmatpush3.bf16.msra.mxu0 %v4816_v33 }
 0x182   : > { %5431 = vrot.lane.b32.xlu0 %v5885_v37, %s5779_s12  ;;  %5401 = vrot.lane.b32.xlu1 %v5969_v23, %s5778_s11 }
 0x183   : > { %4818 = vmatprep.subr.bf16.mxu0 %v5773_v20 }
 0x185   : > { %4820 = vmatpush3.bf16.msra.mxu0 %v4819_v34 }
 0x186   : > { %5441 = vrot.lane.b32.xlu0 %v5883_v35, %s5779_s12  ;;  %5406 = vrot.lane.b32.xlu1 %v5967_v19, %s5778_s11 }
 0x187   : > { %4821 = vmatprep.subr.bf16.mxu0 %v5773_v20 }
 0x18a   : > { %5451 = vrot.lane.b32.xlu0 %v5927_v61, %s5779_s12  ;;  %5416 = vrot.lane.b32.xlu1 %v5900_v45, %s5779_s12 }
 0x18b   : > { %v5187_v38 = vpop.permute.xlu1 %5186 }
 0x18c   : > { %v5177_v36 = vpop.permute.xlu0 %5176  ;;  %v5189_v42 = vunpack.i.h.bf16 %v5187_v38  ;;  %v5188_v44 = vunpack.i.l.bf16 %v5187_v38 }
 0x18d   : > { %v5179_v39 = vunpack.i.h.bf16 %v5177_v36  ;;  %v5178_v40 = vunpack.i.l.bf16 %v5177_v36 }
 0x18e   : > { %5461 = vrot.lane.b32.xlu0 %v5925_v59, %s5779_s12  ;;  %5426 = vrot.lane.b32.xlu1 %v5898_v43, %s5779_s12  ;;  %v4831_v50 = vpack.c.bf16 %v5189_v42, %v5188_v44 }
 0x18f   : > { %v4828_v41 = vpack.c.bf16 %v5179_v39, %v5178_v40 }
 0x190   : > { %v5192_v46 = vpop.permute.xlu0 %5191 }
 0x191   : > { %v5194_v47 = vunpack.i.h.bf16 %v5192_v46  ;;  %v5193_v48 = vunpack.i.l.bf16 %v5192_v46  ;;  %4829 = vmatpush3.bf16.msra.mxu1 %v4828_v41 }
 0x192   : > { %5471 = vrot.lane.b32.xlu0 %v5941_v5, %s5779_s12  ;;  %5436 = vrot.lane.b32.xlu1 %v5916_v53, %s5779_s12 }
 0x193   : > { %v4822_v49 = vpack.c.bf16 %v5194_v47, %v5193_v48  ;;  %4830 = vmatprep.subr.bf16.mxu1 %v5773_v20 }
 0x194   : > { %v5197_v52 = vpop.permute.xlu0 %5196  ;;  %v5202_v54 = vpop.permute.xlu1 %5201 }
 0x195   : > { %v5199_v55 = vunpack.i.h.bf16 %v5197_v52  ;;  %v5198_v56 = vunpack.i.l.bf16 %v5197_v52  ;;  %4823 = vmatpush3.bf16.msra.mxu0 %v4822_v49  ;;  %4832 = vmatpush3.bf16.msra.mxu1 %v4831_v50  ;;  %v5204_v57 = vunpack.i.h.bf16 %v5202_v54  ;;  %v5203_v58 = vunpack.i.l.bf16 %v5202_v54 }
 0x196   : > { %5476 = vrot.lane.b32.xlu0 %v5939_v3, %s5779_s12  ;;  %5446 = vrot.lane.b32.xlu1 %v5914_v51, %s5779_s12 }
 0x197   : > { %v4825_v60 = vpack.c.bf16 %v5199_v55, %v5198_v56  ;;  %4824 = vmatprep.subr.bf16.mxu0 %v5773_v20  ;;  %v4834_v62 = vpack.c.bf16 %v5204_v57, %v5203_v58  ;;  %4833 = vmatprep.subr.bf16.mxu1 %v5773_v20 }
 0x198   : > { %v5207_v63 = vpop.permute.xlu1 %5206 }
 0x199   : > { %4826 = vmatpush3.bf16.msra.mxu0 %v4825_v60  ;;  %v5209_v1 = vunpack.i.h.bf16 %v5207_v63  ;;  %v5208_v2 = vunpack.i.l.bf16 %v5207_v63  ;;  %4835 = vmatpush3.bf16.msra.mxu1 %v4834_v62 }
 0x19a   : > { %5491 = vrot.lane.b32.xlu0 %v5875_v28, %s5780_s13  ;;  %5456 = vrot.lane.b32.xlu1 %v5951_v13, %s5779_s12 }
 0x19b   : > { %4839 = vmatprep.subr.bf16.mxu0 %v5773_v20  ;;  %v4837_v4 = vpack.c.bf16 %v5209_v1, %v5208_v2  ;;  %4836 = vmatprep.subr.bf16.mxu1 %v5773_v20 }
 0x19c   : > { %v5212_v6 = vpop.permute.xlu0 %5211  ;;  %4252 = vmatmul.mubr.msk.f32.vlgmr.msra.gmra.mrb[32].mxu0 %vm373_vm0, %v6072_v0 }
 0x19d   : > { %v5214_v7 = vunpack.i.h.bf16 %v5212_v6  ;;  %v5213_v8 = vunpack.i.l.bf16 %v5212_v6  ;;  %4838 = vmatpush3.bf16.msra.mxu1 %v4837_v4  ;;  %4289 = vmatprep.mubr.msk.f32.mxu0 %vm5774_vm1, %v5775_v21 }
 0x19e   : > { %5501 = vrot.lane.b32.xlu0 %v5873_v26, %s5780_s13  ;;  %5466 = vrot.lane.b32.xlu1 %v5949_v11, %s5779_s12 }
 0x19f   : > { %v4840_v9 = vpack.c.bf16 %v5214_v7, %v5213_v8  ;;  %4851 = vmatprep.subr.bf16.mxu1 %v5773_v20 }
 0x1a0   : > { %v5217_v10 = vpop.permute.xlu0 %5216  ;;  %4271 = vmatmul.mubr.msk.f32.vlgmr.msra.gmra.mrb[8].mxu1 %vm373_vm0, %v6072_v0 }
 0x1a1   : > { %v5219_v12 = vunpack.i.h.bf16 %v5217_v10  ;;  %v5218_v14 = vunpack.i.l.bf16 %v5217_v10  ;;  %4841 = vmatpush3.bf16.msra.mxu0 %v4840_v9  ;;  %4308 = vmatprep.mubr.msk.f32.mxu1 %vm5774_vm1, %v5775_v21 }
 0x1a2   : > { %5511 = vrot.lane.b32.xlu0 %v5885_v37, %s5780_s13  ;;  %5481 = vrot.lane.b32.xlu1 %v5969_v23, %s5779_s12 }
 0x1a3   : > { %v4843_v15 = vpack.c.bf16 %v5219_v12, %v5218_v14  ;;  %4842 = vmatprep.subr.bf16.mxu0 %v5773_v20 }
 0x1a4   : > { %v5232_v16 = vpop.permute.xlu0 %5231 }
 0x1a5   : > { %v5234_v17 = vunpack.i.h.bf16 %v5232_v16  ;;  %v5233_v18 = vunpack.i.l.bf16 %v5232_v16  ;;  %4844 = vmatpush3.bf16.msra.mxu0 %v4843_v15 }
 0x1a6   : > { %5521 = vrot.lane.b32.xlu0 %v5883_v35, %s5780_s13  ;;  %5486 = vrot.lane.b32.xlu1 %v5967_v19, %s5779_s12 }
 0x1a7   : > { %v4846_v22 = vpack.c.bf16 %v5234_v17, %v5233_v18  ;;  %4845 = vmatprep.subr.bf16.mxu0 %v5773_v20  ;;  %v6136_v17 = vld [vmem:[%s5892_s9 + $0x10] sm:$0x7f] }
 0x1a8   : > { %v5237_v24 = vpop.permute.xlu0 %5236 }
 0x1a9   : > { %v5239_v25 = vunpack.i.h.bf16 %v5237_v24  ;;  %v5238_v27 = vunpack.i.l.bf16 %v5237_v24  ;;  %4847 = vmatpush3.bf16.msra.mxu0 %v4846_v22 }
 0x1aa   : > { %5531 = vrot.lane.b32.xlu0 %v5927_v61, %s5780_s13  ;;  %5496 = vrot.lane.b32.xlu1 %v5900_v45, %s5780_s13 }
 0x1ab   : > { %v4849_v29 = vpack.c.bf16 %v5239_v25, %v5238_v27  ;;  %4848 = vmatprep.subr.bf16.mxu0 %v5773_v20 }
 0x1ac   : > { %v5252_v30 = vpop.permute.xlu0 %5251  ;;  %v5222_v31 = vpop.permute.xlu1 %5221 }
 0x1ad   : > { %v5254_v32 = vunpack.i.h.bf16 %v5252_v30  ;;  %v5253_v33 = vunpack.i.l.bf16 %v5252_v30  ;;  %v5224_v34 = vunpack.i.h.bf16 %v5222_v31  ;;  %v5223_v36 = vunpack.i.l.bf16 %v5222_v31  ;;  %4850 = vmatpush3.bf16.msra.mxu0 %v4849_v29 }
 0x1ae   : > { %5541 = vrot.lane.b32.xlu0 %v5925_v59, %s5780_s13  ;;  %5506 = vrot.lane.b32.xlu1 %v5898_v43, %s5780_s13 }
 0x1af   : > { %v4864_v38 = vpack.c.bf16 %v5254_v32, %v5253_v33  ;;  %v4852_v39 = vpack.c.bf16 %v5224_v34, %v5223_v36  ;;  %4863 = vmatprep.subr.bf16.mxu0 %v5773_v20 }
 0x1b0   : > { %v5262_v40 = vpop.permute.xlu0 %5261  ;;  %v5227_v41 = vpop.permute.xlu1 %5226  ;;  %4290 = vmatmul.mubr.msk.f32.vlgmr.msra.gmra.mrb[34].mxu0 %vm373_vm0, %v6072_v0 }
 0x1b1   : > { %v5264_v42 = vunpack.i.h.bf16 %v5262_v40  ;;  %v5263_v44 = vunpack.i.l.bf16 %v5262_v40  ;;  %v5229_v46 = vunpack.i.h.bf16 %v5227_v41  ;;  %v5228_v47 = vunpack.i.l.bf16 %v5227_v41  ;;  %4853 = vmatpush3.bf16.msra.mxu1 %v4852_v39  ;;  %4865 = vmatpush3.bf16.msra.mxu0 %v4864_v38 }
 0x1b2   : > { %5551 = vrot.lane.b32.xlu0 %v5941_v5, %s5780_s13  ;;  %5516 = vrot.lane.b32.xlu1 %v5916_v53, %s5780_s13 }
 0x1b3   : > { %v4867_v48 = vpack.c.bf16 %v5264_v42, %v5263_v44  ;;  %v4855_v49 = vpack.c.bf16 %v5229_v46, %v5228_v47  ;;  %4866 = vmatprep.subr.bf16.mxu0 %v5773_v20  ;;  %4854 = vmatprep.subr.bf16.mxu1 %v5773_v20 }
 0x1b4   : > { %v5272_v50 = vpop.permute.xlu0 %5271  ;;  %v5242_v52 = vpop.permute.xlu1 %5241  ;;  %4327 = vmatprep.mubr.msk.f32.mxu0 %vm5774_vm1, %v5775_v21 }
 0x1b5   : > { %v5274_v54 = vunpack.i.h.bf16 %v5272_v50  ;;  %v5273_v55 = vunpack.i.l.bf16 %v5272_v50  ;;  %v5244_v56 = vunpack.i.h.bf16 %v5242_v52  ;;  %v5243_v57 = vunpack.i.l.bf16 %v5242_v52  ;;  %4856 = vmatpush3.bf16.msra.mxu1 %v4855_v49  ;;  %4868 = vmatpush3.bf16.msra.mxu0 %v4867_v48 }
 0x1b6   : > { %5556 = vrot.lane.b32.xlu0 %v5939_v3, %s5780_s13  ;;  %5526 = vrot.lane.b32.xlu1 %v5914_v51, %s5780_s13 }
 0x1b7   : > { %v4870_v58 = vpack.c.bf16 %v5274_v54, %v5273_v55  ;;  %v4858_v60 = vpack.c.bf16 %v5244_v56, %v5243_v57  ;;  %4869 = vmatprep.subr.bf16.mxu0 %v5773_v20  ;;  %4857 = vmatprep.subr.bf16.mxu1 %v5773_v20 }
 0x1b8   : > { %v5282_v62 = vpop.permute.xlu0 %5281  ;;  %v5247_v63 = vpop.permute.xlu1 %5246 }
 0x1b9   : > { %v5284_v1 = vunpack.i.h.bf16 %v5282_v62  ;;  %v5283_v2 = vunpack.i.l.bf16 %v5282_v62  ;;  %v5249_v4 = vunpack.i.h.bf16 %v5247_v63  ;;  %v5248_v6 = vunpack.i.l.bf16 %v5247_v63  ;;  %4859 = vmatpush3.bf16.msra.mxu1 %v4858_v60  ;;  %4871 = vmatpush3.bf16.msra.mxu0 %v4870_v58 }
 0x1ba   : > { %5571 = vrot.lane.b32.xlu0 %v5875_v28, %s5781_s14  ;;  %5536 = vrot.lane.b32.xlu1 %v5951_v13, %s5780_s13 }
 0x1bb   : > { %v4873_v7 = vpack.c.bf16 %v5284_v1, %v5283_v2  ;;  %v4861_v8 = vpack.c.bf16 %v5249_v4, %v5248_v6  ;;  %4872 = vmatprep.subr.bf16.mxu0 %v5773_v20  ;;  %4860 = vmatprep.subr.bf16.mxu1 %v5773_v20 }
 0x1bc   : > { %v5292_v9 = vpop.permute.xlu0 %5291  ;;  %v5257_v10 = vpop.permute.xlu1 %5256 }
 0x1bd   : > { %v5294_v12 = vunpack.i.h.bf16 %v5292_v9  ;;  %v5293_v14 = vunpack.i.l.bf16 %v5292_v9  ;;  %v5259_v15 = vunpack.i.h.bf16 %v5257_v10  ;;  %v5258_v16 = vunpack.i.l.bf16 %v5257_v10  ;;  %4862 = vmatpush3.bf16.msra.mxu1 %v4861_v8  ;;  %4874 = vmatpush3.bf16.msra.mxu0 %v4873_v7 }
 0x1be   : > { %5581 = vrot.lane.b32.xlu0 %v5873_v26, %s5781_s14  ;;  %5546 = vrot.lane.b32.xlu1 %v5949_v11, %s5780_s13 }
 0x1bf   : > { %v4888_v18 = vpack.c.bf16 %v5294_v12, %v5293_v14  ;;  %v4876_v22 = vpack.c.bf16 %v5259_v15, %v5258_v16  ;;  %4887 = vmatprep.subr.bf16.mxu0 %v5773_v20  ;;  %4875 = vmatprep.subr.bf16.mxu1 %v5773_v20 }
 0x1c0   : > { %v5302_v24 = vpop.permute.xlu0 %5301  ;;  %v5267_v25 = vpop.permute.xlu1 %5266  ;;  %4309 = vmatmul.mubr.msk.f32.vlgmr.msra.gmra.mrb[10].mxu1 %vm373_vm0, %v6072_v0  ;;  %4328 = vmatmul.mubr.msk.f32.vlgmr.msra.gmra.mrb[36].mxu0 %vm373_vm0, %v6136_v17 }
 0x1c1   : > { %v5304_v27 = vunpack.i.h.bf16 %v5302_v24  ;;  %v5303_v29 = vunpack.i.l.bf16 %v5302_v24  ;;  %v5269_v30 = vunpack.i.h.bf16 %v5267_v25  ;;  %v5268_v31 = vunpack.i.l.bf16 %v5267_v25  ;;  %4877 = vmatpush3.bf16.msra.mxu1 %v4876_v22  ;;  %4889 = vmatpush3.bf16.msra.mxu0 %v4888_v18 }
 0x1c2   : > { %5591 = vrot.lane.b32.xlu0 %v5885_v37, %s5781_s14  ;;  %5561 = vrot.lane.b32.xlu1 %v5969_v23, %s5780_s13 }
 0x1c3   : > { %v4891_v32 = vpack.c.bf16 %v5304_v27, %v5303_v29  ;;  %v4879_v33 = vpack.c.bf16 %v5269_v30, %v5268_v31  ;;  %4890 = vmatprep.subr.bf16.mxu0 %v5773_v20  ;;  %4878 = vmatprep.subr.bf16.mxu1 %v5773_v20 }
 0x1c4   : > { %v5312_v0 = vpop.permute.xlu0 %5311  ;;  %v5277_v34 = vpop.permute.xlu1 %5276  ;;  %4365 = vmatprep.mubr.msk.f32.mxu0 %vm5774_vm1, %v5775_v21  ;;  %4346 = vmatprep.mubr.msk.f32.mxu1 %vm5774_vm1, %v5775_v21 }
 0x1c5   : > { %v5314_v36 = vunpack.i.h.bf16 %v5312_v0  ;;  %v5313_v38 = vunpack.i.l.bf16 %v5312_v0  ;;  %v5279_v39 = vunpack.i.h.bf16 %v5277_v34  ;;  %v5278_v40 = vunpack.i.l.bf16 %v5277_v34  ;;  %4880 = vmatpush3.bf16.msra.mxu1 %v4879_v33  ;;  %4892 = vmatpush3.bf16.msra.mxu0 %v4891_v32 }
 0x1c6   : > { %5601 = vrot.lane.b32.xlu0 %v5883_v35, %s5781_s14  ;;  %5566 = vrot.lane.b32.xlu1 %v5967_v19, %s5780_s13 }
 0x1c7   : > { %v4894_v41 = vpack.c.bf16 %v5314_v36, %v5313_v38  ;;  %v4882_v42 = vpack.c.bf16 %v5279_v39, %v5278_v40  ;;  %4893 = vmatprep.subr.bf16.mxu0 %v5773_v20  ;;  %4881 = vmatprep.subr.bf16.mxu1 %v5773_v20 }
 0x1c8   : > { %v5317_v44 = vpop.permute.xlu0 %5316  ;;  %v5287_v46 = vpop.permute.xlu1 %5286 }
 0x1c9   : > { %v5319_v47 = vunpack.i.h.bf16 %v5317_v44  ;;  %v5318_v48 = vunpack.i.l.bf16 %v5317_v44  ;;  %v5289_v49 = vunpack.i.h.bf16 %v5287_v46  ;;  %v5288_v50 = vunpack.i.l.bf16 %v5287_v46  ;;  %4883 = vmatpush3.bf16.msra.mxu1 %v4882_v42  ;;  %4895 = vmatpush3.bf16.msra.mxu0 %v4894_v41  ;;  %v6203_v46 = vld [vmem:[%s5892_s9 + $0x18] sm:$0x7f] }
 0x1ca   : > { %5611 = vrot.lane.b32.xlu0 %v5927_v61, %s5781_s14  ;;  %5576 = vrot.lane.b32.xlu1 %v5900_v45, %s5781_s14 }
 0x1cb   : > { %v4897_v52 = vpack.c.bf16 %v5319_v47, %v5318_v48  ;;  %v4885_v54 = vpack.c.bf16 %v5289_v49, %v5288_v50  ;;  %4896 = vmatprep.subr.bf16.mxu0 %v5773_v20  ;;  %4884 = vmatprep.subr.bf16.mxu1 %v5773_v20 }
 0x1cc   : > { %v5332_v55 = vpop.permute.xlu0 %5331  ;;  %v5297_v56 = vpop.permute.xlu1 %5296 }
 0x1cd   : > { %v5334_v57 = vunpack.i.h.bf16 %v5332_v55  ;;  %v5333_v58 = vunpack.i.l.bf16 %v5332_v55  ;;  %v5299_v60 = vunpack.i.h.bf16 %v5297_v56  ;;  %v5298_v62 = vunpack.i.l.bf16 %v5297_v56  ;;  %4886 = vmatpush3.bf16.msra.mxu1 %v4885_v54  ;;  %4898 = vmatpush3.bf16.msra.mxu0 %v4897_v52 }
 0x1ce   : > { %5621 = vrot.lane.b32.xlu0 %v5925_v59, %s5781_s14  ;;  %5586 = vrot.lane.b32.xlu1 %v5898_v43, %s5781_s14 }
 0x1cf   : > { %v4912_v63 = vpack.c.bf16 %v5334_v57, %v5333_v58  ;;  %v4900_v1 = vpack.c.bf16 %v5299_v60, %v5298_v62  ;;  %4911 = vmatprep.subr.bf16.mxu0 %v5773_v20  ;;  %4899 = vmatprep.subr.bf16.mxu1 %v5773_v20 }
 0x1d0   : > { %v5342_v2 = vpop.permute.xlu0 %5341  ;;  %v5307_v4 = vpop.permute.xlu1 %5306  ;;  %4347 = vmatmul.mubr.msk.f32.vlgmr.msra.gmra.mrb[12].mxu1 %vm373_vm0, %v6136_v17  ;;  %4366 = vmatmul.mubr.msk.f32.vlgmr.msra.gmra.mrb[38].mxu0 %vm373_vm0, %v6136_v17 }
 0x1d1   : > { %v5344_v6 = vunpack.i.h.bf16 %v5342_v2  ;;  %v5343_v7 = vunpack.i.l.bf16 %v5342_v2  ;;  %v5309_v8 = vunpack.i.h.bf16 %v5307_v4  ;;  %v5308_v9 = vunpack.i.l.bf16 %v5307_v4  ;;  %4901 = vmatpush3.bf16.msra.mxu1 %v4900_v1  ;;  %4913 = vmatpush3.bf16.msra.mxu0 %v4912_v63 }
 0x1d2   : > { %5631 = vrot.lane.b32.xlu0 %v5941_v5, %s5781_s14  ;;  %5596 = vrot.lane.b32.xlu1 %v5916_v53, %s5781_s14 }
 0x1d3   : > { %v4915_v10 = vpack.c.bf16 %v5344_v6, %v5343_v7  ;;  %v4903_v12 = vpack.c.bf16 %v5309_v8, %v5308_v9  ;;  %4914 = vmatprep.subr.bf16.mxu0 %v5773_v20  ;;  %4902 = vmatprep.subr.bf16.mxu1 %v5773_v20 }
 0x1d4   : > { %v5352_v14 = vpop.permute.xlu0 %5351  ;;  %v5322_v15 = vpop.permute.xlu1 %5321  ;;  %4403 = vmatprep.mubr.msk.f32.mxu0 %vm5774_vm1, %v5775_v21  ;;  %4384 = vmatprep.mubr.msk.f32.mxu1 %vm5774_vm1, %v5775_v21 }
 0x1d5   : > { %v5354_v16 = vunpack.i.h.bf16 %v5352_v14  ;;  %v5353_v18 = vunpack.i.l.bf16 %v5352_v14  ;;  %v5324_v22 = vunpack.i.h.bf16 %v5322_v15  ;;  %v5323_v24 = vunpack.i.l.bf16 %v5322_v15  ;;  %4904 = vmatpush3.bf16.msra.mxu1 %v4903_v12  ;;  %4916 = vmatpush3.bf16.msra.mxu0 %v4915_v10 }
 0x1d6   : > { %5636 = vrot.lane.b32.xlu0 %v5939_v3, %s5781_s14  ;;  %5606 = vrot.lane.b32.xlu1 %v5914_v51, %s5781_s14 }
 0x1d7   : > { %v4918_v25 = vpack.c.bf16 %v5354_v16, %v5353_v18  ;;  %v4906_v27 = vpack.c.bf16 %v5324_v22, %v5323_v24  ;;  %4917 = vmatprep.subr.bf16.mxu0 %v5773_v20  ;;  %4905 = vmatprep.subr.bf16.mxu1 %v5773_v20 }
 0x1d8   : > { %v5362_v29 = vpop.permute.xlu0 %5361  ;;  %v5327_v30 = vpop.permute.xlu1 %5326 }
 0x1d9   : > { %v5364_v31 = vunpack.i.h.bf16 %v5362_v29  ;;  %v5363_v32 = vunpack.i.l.bf16 %v5362_v29  ;;  %v5329_v33 = vunpack.i.h.bf16 %v5327_v30  ;;  %v5328_v0 = vunpack.i.l.bf16 %v5327_v30  ;;  %4907 = vmatpush3.bf16.msra.mxu1 %v4906_v27  ;;  %4919 = vmatpush3.bf16.msra.mxu0 %v4918_v25 }
 0x1da   : > { %5651 = vrot.lane.b32.xlu0 %v5875_v28, %s5782_s15  ;;  %5616 = vrot.lane.b32.xlu1 %v5951_v13, %s5781_s14 }
 0x1db   : > { %v4921_v34 = vpack.c.bf16 %v5364_v31, %v5363_v32  ;;  %v4909_v36 = vpack.c.bf16 %v5329_v33, %v5328_v0  ;;  %4920 = vmatprep.subr.bf16.mxu0 %v5773_v20  ;;  %4908 = vmatprep.subr.bf16.mxu1 %v5773_v20 }
 0x1dc   : > { %v5372_v38 = vpop.permute.xlu0 %5371  ;;  %v5337_v39 = vpop.permute.xlu1 %5336 }
 0x1dd   : > { %v5374_v40 = vunpack.i.h.bf16 %v5372_v38  ;;  %v5373_v41 = vunpack.i.l.bf16 %v5372_v38  ;;  %v5339_v42 = vunpack.i.h.bf16 %v5337_v39  ;;  %v5338_v44 = vunpack.i.l.bf16 %v5337_v39  ;;  %4910 = vmatpush3.bf16.msra.mxu1 %v4909_v36  ;;  %4922 = vmatpush3.bf16.msra.mxu0 %v4921_v34 }
 0x1de   : > { %5661 = vrot.lane.b32.xlu0 %v5873_v26, %s5782_s15  ;;  %5626 = vrot.lane.b32.xlu1 %v5949_v11, %s5781_s14 }
 0x1df   : > { %v4936_v28 = vpack.c.bf16 %v5374_v40, %v5373_v41  ;;  %v4924_v47 = vpack.c.bf16 %v5339_v42, %v5338_v44  ;;  %4935 = vmatprep.subr.bf16.mxu0 %v5773_v20  ;;  %4923 = vmatprep.subr.bf16.mxu1 %v5773_v20 }
 0x1e0   : > { %v5382_v48 = vpop.permute.xlu0 %5381  ;;  %v5347_v49 = vpop.permute.xlu1 %5346  ;;  %4385 = vmatmul.mubr.msk.f32.vlgmr.msra.gmra.mrb[14].mxu1 %vm373_vm0, %v6136_v17  ;;  %4404 = vmatmul.mubr.msk.f32.vlgmr.msra.gmra.mrb[40].mxu0 %vm373_vm0, %v6203_v46 }
 0x1e1   : > { %v5384_v26 = vunpack.i.h.bf16 %v5382_v48  ;;  %v5383_v50 = vunpack.i.l.bf16 %v5382_v48  ;;  %v5349_v52 = vunpack.i.h.bf16 %v5347_v49  ;;  %v5348_v54 = vunpack.i.l.bf16 %v5347_v49  ;;  %4925 = vmatpush3.bf16.msra.mxu1 %v4924_v47  ;;  %4937 = vmatpush3.bf16.msra.mxu0 %v4936_v28 }
 0x1e2   : > { %5671 = vrot.lane.b32.xlu0 %v5885_v37, %s5782_s15  ;;  %5641 = vrot.lane.b32.xlu1 %v5969_v23, %s5781_s14 }
 0x1e3   : > { %v4939_v17 = vpack.c.bf16 %v5384_v26, %v5383_v50  ;;  %v4927_v55 = vpack.c.bf16 %v5349_v52, %v5348_v54  ;;  %4938 = vmatprep.subr.bf16.mxu0 %v5773_v20  ;;  %4926 = vmatprep.subr.bf16.mxu1 %v5773_v20 }
 0x1e4   : > { %v5392_v56 = vpop.permute.xlu0 %5391  ;;  %v5357_v57 = vpop.permute.xlu1 %5356  ;;  %4441 = vmatprep.mubr.msk.f32.mxu0 %vm5774_vm1, %v5775_v21  ;;  %4422 = vmatprep.mubr.msk.f32.mxu1 %vm5774_vm1, %v5775_v21 }
 0x1e5   : > { %v5394_v37 = vunpack.i.h.bf16 %v5392_v56  ;;  %v5393_v58 = vunpack.i.l.bf16 %v5392_v56  ;;  %v5359_v60 = vunpack.i.h.bf16 %v5357_v57  ;;  %v5358_v62 = vunpack.i.l.bf16 %v5357_v57  ;;  %4928 = vmatpush3.bf16.msra.mxu1 %v4927_v55  ;;  %4940 = vmatpush3.bf16.msra.mxu0 %v4939_v17  ;;  %v6285_v55 = vld [vmem:[%s5892_s9 + $0x20] sm:$0x7f] }
 0x1e6   : > { %5681 = vrot.lane.b32.xlu0 %v5883_v35, %s5782_s15  ;;  %5646 = vrot.lane.b32.xlu1 %v5967_v19, %s5781_s14 }
 0x1e7   : > { %v4942_v63 = vpack.c.bf16 %v5394_v37, %v5393_v58  ;;  %v4930_v1 = vpack.c.bf16 %v5359_v60, %v5358_v62  ;;  %4941 = vmatprep.subr.bf16.mxu0 %v5773_v20  ;;  %4929 = vmatprep.subr.bf16.mxu1 %v5773_v20 }
 0x1e8   : > { %v5397_v2 = vpop.permute.xlu0 %5396  ;;  %v5367_v4 = vpop.permute.xlu1 %5366 }
 0x1e9   : > { %v5399_v6 = vunpack.i.h.bf16 %v5397_v2  ;;  %v5398_v7 = vunpack.i.l.bf16 %v5397_v2  ;;  %v5369_v8 = vunpack.i.h.bf16 %v5367_v4  ;;  %v5368_v9 = vunpack.i.l.bf16 %v5367_v4  ;;  %4931 = vmatpush3.bf16.msra.mxu1 %v4930_v1  ;;  %4943 = vmatpush3.bf16.msra.mxu0 %v4942_v63 }
 0x1ea   : > { %5691 = vrot.lane.b32.xlu0 %v5927_v61, %s5782_s15  ;;  %5656 = vrot.lane.b32.xlu1 %v5900_v45, %s5782_s15 }
 0x1eb   : > { %v4945_v35 = vpack.c.bf16 %v5399_v6, %v5398_v7  ;;  %v4933_v10 = vpack.c.bf16 %v5369_v8, %v5368_v9  ;;  %4944 = vmatprep.subr.bf16.mxu0 %v5773_v20  ;;  %4932 = vmatprep.subr.bf16.mxu1 %v5773_v20 }
 0x1ec   : > { %v5412_v12 = vpop.permute.xlu0 %5411  ;;  %v5377_v14 = vpop.permute.xlu1 %5376 }
 0x1ed   : > { %v5414_v15 = vunpack.i.h.bf16 %v5412_v12  ;;  %v5413_v61 = vunpack.i.l.bf16 %v5412_v12  ;;  %v5379_v16 = vunpack.i.h.bf16 %v5377_v14  ;;  %v5378_v18 = vunpack.i.l.bf16 %v5377_v14  ;;  %4934 = vmatpush3.bf16.msra.mxu1 %v4933_v10  ;;  %4946 = vmatpush3.bf16.msra.mxu0 %v4945_v35  ;;  %v653_v45 = vpop.f32.mrb[0].mxu1 }
 0x1ee   : > { %5701 = vrot.lane.b32.xlu0 %v5925_v59, %s5782_s15  ;;  %5666 = vrot.lane.b32.xlu1 %v5898_v43, %s5782_s15  ;;  %868 = vst.msk [vmem:[%s6250_s21] sm:$0x7f] %vm867_vm2, %v653_v45  ;;  %v4177_v22 = vpop.f32.mrb[1].mxu1 }
 0x1ef   : > { %v4960_v24 = vpack.c.bf16 %v5414_v15, %v5413_v61  ;;  %v4948_v25 = vpack.c.bf16 %v5379_v16, %v5378_v18  ;;  %4959 = vmatprep.subr.bf16.mxu0 %v5773_v20  ;;  %4947 = vmatprep.subr.bf16.mxu1 %v5773_v20 }
 0x1f0   : > { %v5422_v27 = vpop.permute.xlu0 %5421  ;;  %v5387_v29 = vpop.permute.xlu1 %5386  ;;  %4423 = vmatmul.mubr.msk.f32.vlgmr.msra.gmra.mrb[16].mxu1 %vm373_vm0, %v6203_v46  ;;  %4442 = vmatmul.mubr.msk.f32.vlgmr.msra.gmra.mrb[42].mxu0 %vm373_vm0, %v6203_v46 }
 0x1f1   : > { %v5424_v59 = vunpack.i.h.bf16 %v5422_v27  ;;  %v5423_v30 = vunpack.i.l.bf16 %v5422_v27  ;;  %v5389_v43 = vunpack.i.h.bf16 %v5387_v29  ;;  %v5388_v31 = vunpack.i.l.bf16 %v5387_v29  ;;  %4949 = vmatpush3.bf16.msra.mxu1 %v4948_v25  ;;  %4961 = vmatpush3.bf16.msra.mxu0 %v4960_v24 }
 0x1f2   : > { %5711 = vrot.lane.b32.xlu0 %v5941_v5, %s5782_s15  ;;  %5676 = vrot.lane.b32.xlu1 %v5916_v53, %s5782_s15 }
 0x1f3   : > { %v4963_v32 = vpack.c.bf16 %v5424_v59, %v5423_v30  ;;  %v4951_v33 = vpack.c.bf16 %v5389_v43, %v5388_v31  ;;  %4962 = vmatprep.subr.bf16.mxu0 %v5773_v20  ;;  %4950 = vmatprep.subr.bf16.mxu1 %v5773_v20 }
 0x1f4   : > { %v5432_v0 = vpop.permute.xlu0 %5431  ;;  %v5402_v34 = vpop.permute.xlu1 %5401  ;;  %4479 = vmatprep.mubr.msk.f32.mxu0 %vm5774_vm1, %v5775_v21  ;;  %4460 = vmatprep.mubr.msk.f32.mxu1 %vm5774_vm1, %v5775_v21 }
 0x1f5   : > { %v5434_v36 = vunpack.i.h.bf16 %v5432_v0  ;;  %v5433_v38 = vunpack.i.l.bf16 %v5432_v0  ;;  %v5404_v5 = vunpack.i.h.bf16 %v5402_v34  ;;  %v5403_v39 = vunpack.i.l.bf16 %v5402_v34  ;;  %4952 = vmatpush3.bf16.msra.mxu1 %v4951_v33  ;;  %4964 = vmatpush3.bf16.msra.mxu0 %v4963_v32 }
 0x1f6   : > { %5721 = vrot.lane.b32.xlu0 %v5939_v3, %s5782_s15  ;;  %5686 = vrot.lane.b32.xlu1 %v5914_v51, %s5782_s15 }
 0x1f7   : > { %v4966_v53 = vpack.c.bf16 %v5434_v36, %v5433_v38  ;;  %v4954_v40 = vpack.c.bf16 %v5404_v5, %v5403_v39  ;;  %4965 = vmatprep.subr.bf16.mxu0 %v5773_v20  ;;  %4953 = vmatprep.subr.bf16.mxu1 %v5773_v20 }
 0x1f8   : > { %v5442_v41 = vpop.permute.xlu0 %5441  ;;  %v5407_v42 = vpop.permute.xlu1 %5406 }
 0x1f9   : > { %v5444_v44 = vunpack.i.h.bf16 %v5442_v41  ;;  %v5443_v28 = vunpack.i.l.bf16 %v5442_v41  ;;  %v5409_v47 = vunpack.i.h.bf16 %v5407_v42  ;;  %v5408_v48 = vunpack.i.l.bf16 %v5407_v42  ;;  %4955 = vmatpush3.bf16.msra.mxu1 %v4954_v40  ;;  %4967 = vmatpush3.bf16.msra.mxu0 %v4966_v53 }
 0x1fa   : > { %5696 = vrot.lane.b32.xlu1 %v5951_v13, %s5782_s15  ;;  %4968 = vmatprep.subr.bf16.mxu0 %v5773_v20 }
 0x1fb   : > { %v4969_v51 = vpack.c.bf16 %v5444_v44, %v5443_v28  ;;  %v4957_v3 = vpack.c.bf16 %v5409_v47, %v5408_v48  ;;  %4956 = vmatprep.subr.bf16.mxu1 %v5773_v20 }
 0x1fc   : > { %v5452_v49 = vpop.permute.xlu0 %5451  ;;  %v5417_v26 = vpop.permute.xlu1 %5416 }
 0x1fd   : > { %v5454_v50 = vunpack.i.h.bf16 %v5452_v49  ;;  %v5453_v52 = vunpack.i.l.bf16 %v5452_v49  ;;  %v5419_v54 = vunpack.i.h.bf16 %v5417_v26  ;;  %v5418_v17 = vunpack.i.l.bf16 %v5417_v26  ;;  %4958 = vmatpush3.bf16.msra.mxu1 %v4957_v3  ;;  %4970 = vmatpush3.bf16.msra.mxu0 %v4969_v51  ;;  %v723_v56 = vpop.f32.mrb[2].mxu1 }
 0x1fe   : > { %5706 = vrot.lane.b32.xlu1 %v5949_v11, %s5782_s15  ;;  %4983 = vmatprep.subr.bf16.mxu0 %v5773_v20  ;;  %869 = vst.msk [vmem:[%s6250_s21 + $0x8] sm:$0x7f] %vm867_vm2, %v723_v56  ;;  %v4196_v13 = vpop.f32.mrb[3].mxu1 }
 0x1ff   : > { %v4984_v57 = vpack.c.bf16 %v5454_v50, %v5453_v52  ;;  %v4972_v37 = vpack.c.bf16 %v5419_v54, %v5418_v17  ;;  %4971 = vmatprep.subr.bf16.mxu1 %v5773_v20 }
 0x200   : > { %v5462_v58 = vpop.permute.xlu0 %5461  ;;  %v5427_v60 = vpop.permute.xlu1 %5426  ;;  %4461 = vmatmul.mubr.msk.f32.vlgmr.msra.gmra.mrb[18].mxu1 %vm373_vm0, %v6203_v46  ;;  %4480 = vmatmul.mubr.msk.f32.vlgmr.msra.gmra.mrb[44].mxu0 %vm373_vm0, %v6285_v55 }
 0x201   : > { %v5464_v62 = vunpack.i.h.bf16 %v5462_v58  ;;  %v5463_v63 = vunpack.i.l.bf16 %v5462_v58  ;;  %v5429_v11 = vunpack.i.h.bf16 %v5427_v60  ;;  %v5428_v1 = vunpack.i.l.bf16 %v5427_v60  ;;  %4973 = vmatpush3.bf16.msra.mxu1 %v4972_v37  ;;  %4985 = vmatpush3.bf16.msra.mxu0 %v4984_v57 }
 0x202   : > { %5716 = vrot.lane.b32.xlu1 %v5969_v23, %s5782_s15  ;;  %4986 = vmatprep.subr.bf16.mxu0 %v5773_v20 }
 0x203   : > { %v4987_v2 = vpack.c.bf16 %v5464_v62, %v5463_v63  ;;  %v4975_v4 = vpack.c.bf16 %v5429_v11, %v5428_v1  ;;  %4974 = vmatprep.subr.bf16.mxu1 %v5773_v20  ;;  %4517 = vmatprep.mubr.msk.f32.mxu0 %vm5774_vm1, %v5775_v21  ;;  %v6330_v63 = vld [vmem:[%s5892_s9 + $0x28] sm:$0x7f] }
 0x204   : > { %v5472_v46 = vpop.permute.xlu0 %5471  ;;  %v5437_v6 = vpop.permute.xlu1 %5436  ;;  %4498 = vmatprep.mubr.msk.f32.mxu1 %vm5774_vm1, %v5775_v21 }
 0x205   : > { %v5474_v7 = vunpack.i.h.bf16 %v5472_v46  ;;  %v5473_v8 = vunpack.i.l.bf16 %v5472_v46  ;;  %v5439_v9 = vunpack.i.h.bf16 %v5437_v6  ;;  %v5438_v35 = vunpack.i.l.bf16 %v5437_v6  ;;  %4976 = vmatpush3.bf16.msra.mxu1 %v4975_v4  ;;  %4988 = vmatpush3.bf16.msra.mxu0 %v4987_v2 }
 0x206   : > { %5726 = vrot.lane.b32.xlu1 %v5967_v19, %s5782_s15  ;;  %4989 = vmatprep.subr.bf16.mxu0 %v5773_v20 }
 0x207   : > { %v4990_v23 = vpack.c.bf16 %v5474_v7, %v5473_v8  ;;  %v4978_v10 = vpack.c.bf16 %v5439_v9, %v5438_v35  ;;  %4977 = vmatprep.subr.bf16.mxu1 %v5773_v20 }
 0x208   : > { %v5477_v12 = vpop.permute.xlu0 %5476  ;;  %v5447_v14 = vpop.permute.xlu1 %5446 }
 0x209   : > { %v5479_v15 = vunpack.i.h.bf16 %v5477_v12  ;;  %v5478_v61 = vunpack.i.l.bf16 %v5477_v12  ;;  %v5449_v16 = vunpack.i.h.bf16 %v5447_v14  ;;  %v5448_v18 = vunpack.i.l.bf16 %v5447_v14  ;;  %4979 = vmatpush3.bf16.msra.mxu1 %v4978_v10  ;;  %4991 = vmatpush3.bf16.msra.mxu0 %v4990_v23 }
 0x20a   : > { %4992 = vmatprep.subr.bf16.mxu0 %v5773_v20  ;;  %4980 = vmatprep.subr.bf16.mxu1 %v5773_v20 }
 0x20b   : > { %v4993_v19 = vpack.c.bf16 %v5479_v15, %v5478_v61  ;;  %v4981_v45 = vpack.c.bf16 %v5449_v16, %v5448_v18 }
 0x20c   : > { %v5492_v22 = vpop.permute.xlu0 %5491  ;;  %v5457_v24 = vpop.permute.xlu1 %5456 }
 0x20d   : > { %v5494_v25 = vunpack.i.h.bf16 %v5492_v22  ;;  %v5493_v27 = vunpack.i.l.bf16 %v5492_v22  ;;  %v5459_v29 = vunpack.i.h.bf16 %v5457_v24  ;;  %v5458_v59 = vunpack.i.l.bf16 %v5457_v24  ;;  %4982 = vmatpush3.bf16.msra.mxu1 %v4981_v45  ;;  %4994 = vmatpush3.bf16.msra.mxu0 %v4993_v19 }
 0x20e   : > { %5007 = vmatprep.subr.bf16.mxu0 %v5773_v20  ;;  %4995 = vmatprep.subr.bf16.mxu1 %v5773_v20  ;;  %v793_v30 = vpop.f32.mrb[4].mxu1 }
 0x20f   : > { %v5008_v43 = vpack.c.bf16 %v5494_v25, %v5493_v27  ;;  %v4996_v31 = vpack.c.bf16 %v5459_v29, %v5458_v59  ;;  %870 = vst.msk [vmem:[%s6250_s21 + $0x10] sm:$0x7f] %vm867_vm2, %v793_v30  ;;  %v4215_v32 = vpop.f32.mrb[5].mxu1 }
 0x210   : > { %v5502_v33 = vpop.permute.xlu0 %5501  ;;  %v5467_v0 = vpop.permute.xlu1 %5466  ;;  %4499 = vmatmul.mubr.msk.f32.vlgmr.msra.gmra.mrb[20].mxu1 %vm373_vm0, %v6285_v55  ;;  %4518 = vmatmul.mubr.msk.f32.vlgmr.msra.gmra.mrb[46].mxu0 %vm373_vm0, %v6285_v55 }
 0x211   : > { %v5504_v34 = vunpack.i.h.bf16 %v5502_v33  ;;  %v5503_v36 = vunpack.i.l.bf16 %v5502_v33  ;;  %v5469_v38 = vunpack.i.h.bf16 %v5467_v0  ;;  %v5468_v5 = vunpack.i.l.bf16 %v5467_v0  ;;  %4997 = vmatpush3.bf16.msra.mxu1 %v4996_v31  ;;  %5009 = vmatpush3.bf16.msra.mxu0 %v5008_v43 }
 0x212   : > { %5010 = vmatprep.subr.bf16.mxu0 %v5773_v20  ;;  %4998 = vmatprep.subr.bf16.mxu1 %v5773_v20 }
 0x213   : > { %v5011_v39 = vpack.c.bf16 %v5504_v34, %v5503_v36  ;;  %v4999_v53 = vpack.c.bf16 %v5469_v38, %v5468_v5  ;;  %4555 = vmatprep.mubr.msk.f32.mxu0 %vm5774_vm1, %v5775_v21  ;;  %4536 = vmatprep.mubr.msk.f32.mxu1 %vm5774_vm1, %v5775_v21 }
 0x214   : > { %v5512_v40 = vpop.permute.xlu0 %5511  ;;  %v5482_v41 = vpop.permute.xlu1 %5481 }
 0x215   : > { %v5514_v42 = vunpack.i.h.bf16 %v5512_v40  ;;  %v5513_v44 = vunpack.i.l.bf16 %v5512_v40  ;;  %v5484_v28 = vunpack.i.h.bf16 %v5482_v41  ;;  %v5483_v47 = vunpack.i.l.bf16 %v5482_v41  ;;  %5000 = vmatpush3.bf16.msra.mxu1 %v4999_v53  ;;  %5012 = vmatpush3.bf16.msra.mxu0 %v5011_v39 }
 0x216   : > { %5013 = vmatprep.subr.bf16.mxu0 %v5773_v20  ;;  %5001 = vmatprep.subr.bf16.mxu1 %v5773_v20 }
 0x217   : > { %v5014_v48 = vpack.c.bf16 %v5514_v42, %v5513_v44  ;;  %v5002_v51 = vpack.c.bf16 %v5484_v28, %v5483_v47 }
 0x218   : > { %v5522_v3 = vpop.permute.xlu0 %5521  ;;  %v5487_v49 = vpop.permute.xlu1 %5486 }
 0x219   : > { %v5524_v26 = vunpack.i.h.bf16 %v5522_v3  ;;  %v5523_v50 = vunpack.i.l.bf16 %v5522_v3  ;;  %v5489_v52 = vunpack.i.h.bf16 %v5487_v49  ;;  %v5488_v54 = vunpack.i.l.bf16 %v5487_v49  ;;  %5003 = vmatpush3.bf16.msra.mxu1 %v5002_v51  ;;  %5015 = vmatpush3.bf16.msra.mxu0 %v5014_v48 }
 0x21a   : > { %5016 = vmatprep.subr.bf16.mxu0 %v5773_v20  ;;  %5004 = vmatprep.subr.bf16.mxu1 %v5773_v20 }
 0x21b   : > { %v5017_v17 = vpack.c.bf16 %v5524_v26, %v5523_v50  ;;  %v5005_v56 = vpack.c.bf16 %v5489_v52, %v5488_v54 }
 0x21c   : > { %v5532_v13 = vpop.permute.xlu0 %5531  ;;  %v5497_v57 = vpop.permute.xlu1 %5496 }
 0x21d   : > { %v5534_v37 = vunpack.i.h.bf16 %v5532_v13  ;;  %v5533_v58 = vunpack.i.l.bf16 %v5532_v13  ;;  %v5499_v60 = vunpack.i.h.bf16 %v5497_v57  ;;  %v5498_v62 = vunpack.i.l.bf16 %v5497_v57  ;;  %5006 = vmatpush3.bf16.msra.mxu1 %v5005_v56  ;;  %5018 = vmatpush3.bf16.msra.mxu0 %v5017_v17 }
 0x21e   : > { %5031 = vmatprep.subr.bf16.mxu0 %v5773_v20  ;;  %5019 = vmatprep.subr.bf16.mxu1 %v5773_v20  ;;  %v863_v11 = vpop.f32.mrb[6].mxu1 }
 0x21f   : > { %v5032_v1 = vpack.c.bf16 %v5534_v37, %v5533_v58  ;;  %v5020_v2 = vpack.c.bf16 %v5499_v60, %v5498_v62  ;;  %871 = vst.msk [vmem:[%s6250_s21 + $0x18] sm:$0x7f] %vm867_vm2, %v863_v11  ;;  %v4234_v4 = vpop.f32.mrb[7].mxu1 }
 0x220   : > { %v5542_v46 = vpop.permute.xlu0 %5541  ;;  %v5507_v6 = vpop.permute.xlu1 %5506  ;;  %4537 = vmatmul.mubr.msk.f32.vlgmr.msra.gmra.mrb[22].mxu1 %vm373_vm0, %v6285_v55  ;;  %4556 = vmatmul.mubr.msk.f32.vlgmr.msra.gmra.mrb[48].mxu0 %vm373_vm0, %v6330_v63 }
 0x221   : > { %v5544_v7 = vunpack.i.h.bf16 %v5542_v46  ;;  %v5543_v8 = vunpack.i.l.bf16 %v5542_v46  ;;  %v5509_v9 = vunpack.i.h.bf16 %v5507_v6  ;;  %v5508_v35 = vunpack.i.l.bf16 %v5507_v6  ;;  %5021 = vmatpush3.bf16.msra.mxu1 %v5020_v2  ;;  %5033 = vmatpush3.bf16.msra.mxu0 %v5032_v1  ;;  %v6367_v6 = vld [vmem:[%s5892_s9 + $0x30] sm:$0x7f] }
 0x222   : > { %5034 = vmatprep.subr.bf16.mxu0 %v5773_v20  ;;  %5022 = vmatprep.subr.bf16.mxu1 %v5773_v20 }
 0x223   : > { %v5035_v23 = vpack.c.bf16 %v5544_v7, %v5543_v8  ;;  %v5023_v10 = vpack.c.bf16 %v5509_v9, %v5508_v35  ;;  %4593 = vmatprep.mubr.msk.f32.mxu0 %vm5774_vm1, %v5775_v21  ;;  %4574 = vmatprep.mubr.msk.f32.mxu1 %vm5774_vm1, %v5775_v21 }
 0x224   : > { %v5552_v55 = vpop.permute.xlu0 %5551  ;;  %v5517_v12 = vpop.permute.xlu1 %5516 }
 0x225   : > { %v5554_v14 = vunpack.i.h.bf16 %v5552_v55  ;;  %v5553_v15 = vunpack.i.l.bf16 %v5552_v55  ;;  %v5519_v61 = vunpack.i.h.bf16 %v5517_v12  ;;  %v5518_v16 = vunpack.i.l.bf16 %v5517_v12  ;;  %5024 = vmatpush3.bf16.msra.mxu1 %v5023_v10  ;;  %5036 = vmatpush3.bf16.msra.mxu0 %v5035_v23 }
 0x226   : > { %5037 = vmatprep.subr.bf16.mxu0 %v5773_v20  ;;  %5025 = vmatprep.subr.bf16.mxu1 %v5773_v20 }
 0x227   : > { %v5038_v18 = vpack.c.bf16 %v5554_v14, %v5553_v15  ;;  %v5026_v19 = vpack.c.bf16 %v5519_v61, %v5518_v16 }
 0x228   : > { %v5557_v45 = vpop.permute.xlu0 %5556  ;;  %v5527_v22 = vpop.permute.xlu1 %5526 }
 0x229   : > { %v5559_v24 = vunpack.i.h.bf16 %v5557_v45  ;;  %v5558_v25 = vunpack.i.l.bf16 %v5557_v45  ;;  %v5529_v27 = vunpack.i.h.bf16 %v5527_v22  ;;  %v5528_v29 = vunpack.i.l.bf16 %v5527_v22  ;;  %5027 = vmatpush3.bf16.msra.mxu1 %v5026_v19  ;;  %5039 = vmatpush3.bf16.msra.mxu0 %v5038_v18 }
 0x22a   : > { %5040 = vmatprep.subr.bf16.mxu0 %v5773_v20  ;;  %5028 = vmatprep.subr.bf16.mxu1 %v5773_v20 }
 0x22b   : > { %v5041_v59 = vpack.c.bf16 %v5559_v24, %v5558_v25  ;;  %v5029_v30 = vpack.c.bf16 %v5529_v27, %v5528_v29 }
 0x22c   : > { %v5572_v43 = vpop.permute.xlu0 %5571  ;;  %v5537_v31 = vpop.permute.xlu1 %5536 }
 0x22d   : > { %v5574_v32 = vunpack.i.h.bf16 %v5572_v43  ;;  %v5573_v33 = vunpack.i.l.bf16 %v5572_v43  ;;  %v5539_v0 = vunpack.i.h.bf16 %v5537_v31  ;;  %v5538_v34 = vunpack.i.l.bf16 %v5537_v31  ;;  %5030 = vmatpush3.bf16.msra.mxu1 %v5029_v30  ;;  %5042 = vmatpush3.bf16.msra.mxu0 %v5041_v59 }
 0x22e   : > { %5055 = vmatprep.subr.bf16.mxu0 %v5773_v20  ;;  %5043 = vmatprep.subr.bf16.mxu1 %v5773_v20 }
 0x22f   : > { %v5056_v36 = vpack.c.bf16 %v5574_v32, %v5573_v33  ;;  %v5044_v38 = vpack.c.bf16 %v5539_v0, %v5538_v34 }
 0x230   : > { %v5582_v5 = vpop.permute.xlu0 %5581  ;;  %v5547_v39 = vpop.permute.xlu1 %5546  ;;  %4575 = vmatmul.mubr.msk.f32.vlgmr.msra.gmra.mrb[24].mxu1 %vm373_vm0, %v6330_v63  ;;  %4594 = vmatmul.mubr.msk.f32.vlgmr.msra.gmra.mrb[50].mxu0 %vm373_vm0, %v6330_v63 }
 0x231   : > { %v5584_v53 = vunpack.i.h.bf16 %v5582_v5  ;;  %v5583_v40 = vunpack.i.l.bf16 %v5582_v5  ;;  %v5549_v41 = vunpack.i.h.bf16 %v5547_v39  ;;  %v5548_v42 = vunpack.i.l.bf16 %v5547_v39  ;;  %5045 = vmatpush3.bf16.msra.mxu1 %v5044_v38  ;;  %5057 = vmatpush3.bf16.msra.mxu0 %v5056_v36 }
 0x232   : > { %5058 = vmatprep.subr.bf16.mxu0 %v5773_v20  ;;  %5046 = vmatprep.subr.bf16.mxu1 %v5773_v20 }
 0x233   : > { %v5059_v44 = vpack.c.bf16 %v5584_v53, %v5583_v40  ;;  %v5047_v28 = vpack.c.bf16 %v5549_v41, %v5548_v42  ;;  %4631 = vmatprep.mubr.msk.f32.mxu0 %vm5774_vm1, %v5775_v21  ;;  %4612 = vmatprep.mubr.msk.f32.mxu1 %vm5774_vm1, %v5775_v21 }
 0x234   : > { %v5592_v47 = vpop.permute.xlu0 %5591  ;;  %v5562_v48 = vpop.permute.xlu1 %5561 }
 0x235   : > { %v5594_v51 = vunpack.i.h.bf16 %v5592_v47  ;;  %v5593_v3 = vunpack.i.l.bf16 %v5592_v47  ;;  %v5564_v49 = vunpack.i.h.bf16 %v5562_v48  ;;  %v5563_v26 = vunpack.i.l.bf16 %v5562_v48  ;;  %5048 = vmatpush3.bf16.msra.mxu1 %v5047_v28  ;;  %5060 = vmatpush3.bf16.msra.mxu0 %v5059_v44 }
 0x236   : > { %5061 = vmatprep.subr.bf16.mxu0 %v5773_v20  ;;  %5049 = vmatprep.subr.bf16.mxu1 %v5773_v20 }
 0x237   : > { %v5062_v50 = vpack.c.bf16 %v5594_v51, %v5593_v3  ;;  %v5050_v52 = vpack.c.bf16 %v5564_v49, %v5563_v26 }
 0x238   : > { %v5602_v54 = vpop.permute.xlu0 %5601  ;;  %v5567_v17 = vpop.permute.xlu1 %5566 }
 0x239   : > { %v5604_v56 = vunpack.i.h.bf16 %v5602_v54  ;;  %v5603_v13 = vunpack.i.l.bf16 %v5602_v54  ;;  %v5569_v57 = vunpack.i.h.bf16 %v5567_v17  ;;  %v5568_v37 = vunpack.i.l.bf16 %v5567_v17  ;;  %5051 = vmatpush3.bf16.msra.mxu1 %v5050_v52  ;;  %5063 = vmatpush3.bf16.msra.mxu0 %v5062_v50 }
 0x23a   : > { %5064 = vmatprep.subr.bf16.mxu0 %v5773_v20  ;;  %5052 = vmatprep.subr.bf16.mxu1 %v5773_v20 }
 0x23b   : > { %v5065_v58 = vpack.c.bf16 %v5604_v56, %v5603_v13  ;;  %v5053_v60 = vpack.c.bf16 %v5569_v57, %v5568_v37 }
 0x23c   : > { %v5612_v62 = vpop.permute.xlu0 %5611  ;;  %v5577_v11 = vpop.permute.xlu1 %5576 }
 0x23d   : > { %v5614_v1 = vunpack.i.h.bf16 %v5612_v62  ;;  %v5613_v2 = vunpack.i.l.bf16 %v5612_v62  ;;  %v5579_v4 = vunpack.i.h.bf16 %v5577_v11  ;;  %v5578_v46 = vunpack.i.l.bf16 %v5577_v11  ;;  %5054 = vmatpush3.bf16.msra.mxu1 %v5053_v60  ;;  %5066 = vmatpush3.bf16.msra.mxu0 %v5065_v58 }
 0x23e   : > { %5079 = vmatprep.subr.bf16.mxu0 %v5773_v20  ;;  %5067 = vmatprep.subr.bf16.mxu1 %v5773_v20 }
 0x23f   : > { %v5080_v7 = vpack.c.bf16 %v5614_v1, %v5613_v2  ;;  %v5068_v8 = vpack.c.bf16 %v5579_v4, %v5578_v46 }
 0x240   : > { %v5622_v9 = vpop.permute.xlu0 %5621  ;;  %v5587_v35 = vpop.permute.xlu1 %5586  ;;  %4613 = vmatmul.mubr.msk.f32.vlgmr.msra.gmra.mrb[26].mxu1 %vm373_vm0, %v6330_v63  ;;  %4632 = vmatmul.mubr.msk.f32.vlgmr.msra.gmra.mrb[52].mxu0 %vm373_vm0, %v6367_v6 }
 0x241   : > { %v5624_v23 = vunpack.i.h.bf16 %v5622_v9  ;;  %v5623_v10 = vunpack.i.l.bf16 %v5622_v9  ;;  %v5589_v55 = vunpack.i.h.bf16 %v5587_v35  ;;  %v5588_v12 = vunpack.i.l.bf16 %v5587_v35  ;;  %5069 = vmatpush3.bf16.msra.mxu1 %v5068_v8  ;;  %5081 = vmatpush3.bf16.msra.mxu0 %v5080_v7  ;;  %v6402_v35 = vld [vmem:[%s5892_s9 + $0x38] sm:$0x7f] }
 0x242   : > { %5082 = vmatprep.subr.bf16.mxu0 %v5773_v20  ;;  %5070 = vmatprep.subr.bf16.mxu1 %v5773_v20 }
 0x243   : > { %v5083_v14 = vpack.c.bf16 %v5624_v23, %v5623_v10  ;;  %v5071_v15 = vpack.c.bf16 %v5589_v55, %v5588_v12  ;;  %4669 = vmatprep.mubr.msk.f32.mxu0 %vm5774_vm1, %v5775_v21  ;;  %4650 = vmatprep.mubr.msk.f32.mxu1 %vm5774_vm1, %v5775_v21 }
 0x244   : > { %v5632_v63 = vpop.permute.xlu0 %5631  ;;  %v5597_v61 = vpop.permute.xlu1 %5596 }
 0x245   : > { %v5634_v16 = vunpack.i.h.bf16 %v5632_v63  ;;  %v5633_v18 = vunpack.i.l.bf16 %v5632_v63  ;;  %v5599_v19 = vunpack.i.h.bf16 %v5597_v61  ;;  %v5598_v45 = vunpack.i.l.bf16 %v5597_v61  ;;  %5072 = vmatpush3.bf16.msra.mxu1 %v5071_v15  ;;  %5084 = vmatpush3.bf16.msra.mxu0 %v5083_v14 }
 0x246   : > { %5085 = vmatprep.subr.bf16.mxu0 %v5773_v20  ;;  %5073 = vmatprep.subr.bf16.mxu1 %v5773_v20 }
 0x247   : > { %v5086_v22 = vpack.c.bf16 %v5634_v16, %v5633_v18  ;;  %v5074_v24 = vpack.c.bf16 %v5599_v19, %v5598_v45 }
 0x248   : > { %v5637_v25 = vpop.permute.xlu0 %5636  ;;  %v5607_v27 = vpop.permute.xlu1 %5606 }
 0x249   : > { %v5639_v29 = vunpack.i.h.bf16 %v5637_v25  ;;  %v5638_v59 = vunpack.i.l.bf16 %v5637_v25  ;;  %v5609_v30 = vunpack.i.h.bf16 %v5607_v27  ;;  %v5608_v43 = vunpack.i.l.bf16 %v5607_v27  ;;  %5075 = vmatpush3.bf16.msra.mxu1 %v5074_v24  ;;  %5087 = vmatpush3.bf16.msra.mxu0 %v5086_v22 }
 0x24a   : > { %5088 = vmatprep.subr.bf16.mxu0 %v5773_v20  ;;  %5076 = vmatprep.subr.bf16.mxu1 %v5773_v20 }
 0x24b   : > { %v5089_v31 = vpack.c.bf16 %v5639_v29, %v5638_v59  ;;  %v5077_v32 = vpack.c.bf16 %v5609_v30, %v5608_v43 }
 0x24c   : > { %v5652_v33 = vpop.permute.xlu0 %5651  ;;  %v5617_v0 = vpop.permute.xlu1 %5616 }
 0x24d   : > { %v5654_v34 = vunpack.i.h.bf16 %v5652_v33  ;;  %v5653_v36 = vunpack.i.l.bf16 %v5652_v33  ;;  %v5619_v38 = vunpack.i.h.bf16 %v5617_v0  ;;  %v5618_v5 = vunpack.i.l.bf16 %v5617_v0  ;;  %5078 = vmatpush3.bf16.msra.mxu1 %v5077_v32  ;;  %5090 = vmatpush3.bf16.msra.mxu0 %v5089_v31 }
 0x24e   : > { %5103 = vmatprep.subr.bf16.mxu0 %v5773_v20  ;;  %5091 = vmatprep.subr.bf16.mxu1 %v5773_v20 }
 0x24f   : > { %v5104_v39 = vpack.c.bf16 %v5654_v34, %v5653_v36  ;;  %v5092_v53 = vpack.c.bf16 %v5619_v38, %v5618_v5 }
 0x250   : > { %v5662_v40 = vpop.permute.xlu0 %5661  ;;  %v5627_v41 = vpop.permute.xlu1 %5626  ;;  %4651 = vmatmul.mubr.msk.f32.vlgmr.msra.gmra.mrb[28].mxu1 %vm373_vm0, %v6367_v6  ;;  %4670 = vmatmul.mubr.msk.f32.vlgmr.msra.gmra.mrb[54].mxu0 %vm373_vm0, %v6367_v6 }
 0x251   : > { %v5664_v42 = vunpack.i.h.bf16 %v5662_v40  ;;  %v5663_v44 = vunpack.i.l.bf16 %v5662_v40  ;;  %v5629_v28 = vunpack.i.h.bf16 %v5627_v41  ;;  %v5628_v47 = vunpack.i.l.bf16 %v5627_v41  ;;  %5093 = vmatpush3.bf16.msra.mxu1 %v5092_v53  ;;  %5105 = vmatpush3.bf16.msra.mxu0 %v5104_v39 }
 0x252   : > { %5106 = vmatprep.subr.bf16.mxu0 %v5773_v20  ;;  %5094 = vmatprep.subr.bf16.mxu1 %v5773_v20 }
 0x253   : > { %v5107_v48 = vpack.c.bf16 %v5664_v42, %v5663_v44  ;;  %v5095_v51 = vpack.c.bf16 %v5629_v28, %v5628_v47  ;;  %4707 = vmatprep.mubr.msk.f32.mxu0 %vm5774_vm1, %v5775_v21  ;;  %4688 = vmatprep.mubr.msk.f32.mxu1 %vm5774_vm1, %v5775_v21 }
 0x254   : > { %v5672_v3 = vpop.permute.xlu0 %5671  ;;  %v5642_v49 = vpop.permute.xlu1 %5641 }
 0x255   : > { %v5674_v26 = vunpack.i.h.bf16 %v5672_v3  ;;  %v5673_v50 = vunpack.i.l.bf16 %v5672_v3  ;;  %v5644_v52 = vunpack.i.h.bf16 %v5642_v49  ;;  %v5643_v54 = vunpack.i.l.bf16 %v5642_v49  ;;  %5096 = vmatpush3.bf16.msra.mxu1 %v5095_v51  ;;  %5108 = vmatpush3.bf16.msra.mxu0 %v5107_v48 }
 0x256   : > { %5109 = vmatprep.subr.bf16.mxu0 %v5773_v20  ;;  %5097 = vmatprep.subr.bf16.mxu1 %v5773_v20 }
 0x257   : > { %v5110_v17 = vpack.c.bf16 %v5674_v26, %v5673_v50  ;;  %v5098_v56 = vpack.c.bf16 %v5644_v52, %v5643_v54 }
 0x258   : > { %v5682_v13 = vpop.permute.xlu0 %5681  ;;  %v5647_v57 = vpop.permute.xlu1 %5646 }
 0x259   : > { %v5684_v37 = vunpack.i.h.bf16 %v5682_v13  ;;  %v5683_v58 = vunpack.i.l.bf16 %v5682_v13  ;;  %v5649_v60 = vunpack.i.h.bf16 %v5647_v57  ;;  %v5648_v62 = vunpack.i.l.bf16 %v5647_v57  ;;  %5099 = vmatpush3.bf16.msra.mxu1 %v5098_v56  ;;  %5111 = vmatpush3.bf16.msra.mxu0 %v5110_v17 }
 0x25a   : > { %5112 = vmatprep.subr.bf16.mxu0 %v5773_v20  ;;  %5100 = vmatprep.subr.bf16.mxu1 %v5773_v20 }
 0x25b   : > { %v5113_v11 = vpack.c.bf16 %v5684_v37, %v5683_v58  ;;  %v5101_v1 = vpack.c.bf16 %v5649_v60, %v5648_v62 }
 0x25c   : > { %v5692_v2 = vpop.permute.xlu0 %5691  ;;  %v5657_v4 = vpop.permute.xlu1 %5656 }
 0x25d   : > { %v5694_v46 = vunpack.i.h.bf16 %v5692_v2  ;;  %v5693_v7 = vunpack.i.l.bf16 %v5692_v2  ;;  %v5659_v8 = vunpack.i.h.bf16 %v5657_v4  ;;  %v5658_v9 = vunpack.i.l.bf16 %v5657_v4  ;;  %5102 = vmatpush3.bf16.msra.mxu1 %v5101_v1  ;;  %5114 = vmatpush3.bf16.msra.mxu0 %v5113_v11 }
 0x25e   : > { %5127 = vmatprep.subr.bf16.mxu0 %v5773_v20  ;;  %5115 = vmatprep.subr.bf16.mxu1 %v5773_v20 }
 0x25f   : > { %v5128_v23 = vpack.c.bf16 %v5694_v46, %v5693_v7  ;;  %v5116_v10 = vpack.c.bf16 %v5659_v8, %v5658_v9 }
 0x260   : > { %v5702_v55 = vpop.permute.xlu0 %5701  ;;  %v5667_v12 = vpop.permute.xlu1 %5666  ;;  %4689 = vmatmul.mubr.msk.f32.vlgmr.msra.gmra.mrb[30].mxu1 %vm373_vm0, %v6367_v6  ;;  %4708 = vmatmul.mubr.msk.f32.vlgmr.msra.gmra.mrb[56].mxu0 %vm373_vm0, %v6402_v35 }
 0x261   : > { %v5704_v14 = vunpack.i.h.bf16 %v5702_v55  ;;  %v5703_v15 = vunpack.i.l.bf16 %v5702_v55  ;;  %v5669_v63 = vunpack.i.h.bf16 %v5667_v12  ;;  %v5668_v61 = vunpack.i.l.bf16 %v5667_v12  ;;  %5117 = vmatpush3.bf16.msra.mxu1 %v5116_v10  ;;  %5129 = vmatpush3.bf16.msra.mxu0 %v5128_v23 }
 0x262   : > { %5130 = vmatprep.subr.bf16.mxu0 %v5773_v20  ;;  %5118 = vmatprep.subr.bf16.mxu1 %v5773_v20 }
 0x263   : > { %v5131_v16 = vpack.c.bf16 %v5704_v14, %v5703_v15  ;;  %v5119_v18 = vpack.c.bf16 %v5669_v63, %v5668_v61  ;;  %4726 = vmatprep.mubr.msk.f32.mxu1 %vm5774_vm1, %v5775_v21  ;;  %4745 = vmatprep.mubr.msk.f32.mxu0 %vm5774_vm1, %v5775_v21 }
 0x264   : > { %v5712_v6 = vpop.permute.xlu0 %5711  ;;  %v5677_v19 = vpop.permute.xlu1 %5676 }
 0x265   : > { %v5714_v45 = vunpack.i.h.bf16 %v5712_v6  ;;  %v5713_v22 = vunpack.i.l.bf16 %v5712_v6  ;;  %v5679_v24 = vunpack.i.h.bf16 %v5677_v19  ;;  %v5678_v25 = vunpack.i.l.bf16 %v5677_v19  ;;  %5120 = vmatpush3.bf16.msra.mxu1 %v5119_v18  ;;  %5132 = vmatpush3.bf16.msra.mxu0 %v5131_v16 }
 0x266   : > { %5133 = vmatprep.subr.bf16.mxu0 %v5773_v20  ;;  %5121 = vmatprep.subr.bf16.mxu1 %v5773_v20 }
 0x267   : > { %v5134_v27 = vpack.c.bf16 %v5714_v45, %v5713_v22  ;;  %v5122_v29 = vpack.c.bf16 %v5679_v24, %v5678_v25 }
 0x268   : > { %v5722_v59 = vpop.permute.xlu0 %5721  ;;  %v5687_v30 = vpop.permute.xlu1 %5686 }
 0x269   : > { %v5724_v43 = vunpack.i.h.bf16 %v5722_v59  ;;  %v5723_v31 = vunpack.i.l.bf16 %v5722_v59  ;;  %v5689_v32 = vunpack.i.h.bf16 %v5687_v30  ;;  %v5688_v33 = vunpack.i.l.bf16 %v5687_v30  ;;  %5123 = vmatpush3.bf16.msra.mxu1 %v5122_v29  ;;  %5135 = vmatpush3.bf16.msra.mxu0 %v5134_v27 }
 0x26a   : > { %5136 = vmatprep.subr.bf16.mxu0 %v5773_v20  ;;  %5124 = vmatprep.subr.bf16.mxu1 %v5773_v20 }
 0x26b   : > { %v5137_v0 = vpack.c.bf16 %v5724_v43, %v5723_v31  ;;  %v5125_v34 = vpack.c.bf16 %v5689_v32, %v5688_v33 }
 0x26c   : > { %v5697_v36 = vpop.permute.xlu1 %5696 }
 0x26d   : > { %v5699_v38 = vunpack.i.h.bf16 %v5697_v36  ;;  %v5698_v5 = vunpack.i.l.bf16 %v5697_v36  ;;  %5126 = vmatpush3.bf16.msra.mxu1 %v5125_v34  ;;  %5138 = vmatpush3.bf16.msra.mxu0 %v5137_v0 }
 0x26e   : > { %5139 = vmatprep.subr.bf16.mxu1 %v5773_v20 }
 0x26f   : > { %v5140_v39 = vpack.c.bf16 %v5699_v38, %v5698_v5  ;;  %v975_v53 = vpop.f32.mrb[32].mxu0 }
 0x270   : > { %v5707_v40 = vpop.permute.xlu1 %5706  ;;  %4727 = vmatmul.mubr.msk.f32.vlgmr.msra.gmra.mrb[32].mxu1 %vm373_vm0, %v6402_v35  ;;  %4746 = vmatmul.mubr.msk.f32.vlgmr.msra.gmra.mrb[58].mxu0 %vm373_vm0, %v6402_v35  ;;  %3747 = vst.msk [vmem:[%s6250_s21 + $0x20] sm:$0x7f] %vm867_vm2, %v975_v53  ;;  %v4253_v41 = vpop.f32.mrb[33].mxu0 }
 0x271   : > { %v5709_v42 = vunpack.i.h.bf16 %v5707_v40  ;;  %v5708_v44 = vunpack.i.l.bf16 %v5707_v40  ;;  %5141 = vmatpush3.bf16.msra.mxu1 %v5140_v39  ;;  %4764 = vmatprep.mubr.msk.f32.mxu1 %vm5774_vm1, %v5775_v21 }
 0x272   : > { %5142 = vmatprep.subr.bf16.mxu1 %v5773_v20 }
 0x273   : > { %v5143_v28 = vpack.c.bf16 %v5709_v42, %v5708_v44  ;;  %v1077_v47 = vpop.f32.mrb[8].mxu1 }
 0x274   : > { %v5717_v48 = vpop.permute.xlu1 %5716  ;;  %3748 = vst.msk [vmem:[%s6250_s21 + $0x28] sm:$0x7f] %vm867_vm2, %v1077_v47  ;;  %v4272_v51 = vpop.f32.mrb[9].mxu1 }
 0x275   : > { %v5719_v3 = vunpack.i.h.bf16 %v5717_v48  ;;  %v5718_v49 = vunpack.i.l.bf16 %v5717_v48  ;;  %5144 = vmatpush3.bf16.msra.mxu1 %v5143_v28 }
 0x276   : > { %5145 = vmatprep.subr.bf16.mxu1 %v5773_v20 }
 0x277   : > { %v5146_v26 = vpack.c.bf16 %v5719_v3, %v5718_v49 }
 0x278   : > { %v5727_v50 = vpop.permute.xlu1 %5726 }
 0x279   : > { %v5729_v52 = vunpack.i.h.bf16 %v5727_v50  ;;  %v5728_v21 = vunpack.i.l.bf16 %v5727_v50  ;;  %5147 = vmatpush3.bf16.msra.mxu1 %v5146_v26 }
 0x27a   : > { %5148 = vmatprep.subr.bf16.mxu1 %v5773_v20 }
 0x27b   : > { %v5149_v54 = vpack.c.bf16 %v5729_v52, %v5728_v21 }
 0x27d   : > { %5150 = vmatpush3.bf16.msra.mxu1 %v5149_v54 }
 0x280   : > { %4765 = vmatmul.mubr.msk.f32.vlgmr.msra.gmra.mrb[34].mxu1 %vm373_vm0, %v6402_v35 }
 0x283   : > { %v1179_v17 = vpop.f32.mrb[34].mxu0 }
 0x284   : > { %3749 = vst.msk [vmem:[%s6250_s21 + $0x30] sm:$0x7f] %vm867_vm2, %v1179_v17  ;;  %v4291_v56 = vpop.f32.mrb[35].mxu0 }
 0x293   : > { %v1281_v13 = vpop.f32.mrb[10].mxu1  ;;  %v1385_v57 = vpop.f32.mrb[36].mxu0 }
 0x294   : > { %3750 = vst.msk [vmem:[%s6250_s21 + $0x38] sm:$0x7f] %vm867_vm2, %v1281_v13  ;;  %v4310_v37 = vpop.f32.mrb[11].mxu1  ;;  %3756 = vst.msk [vmem:[%s6250_s21 + $0x40] sm:$0x7f] %vm867_vm2, %v1385_v57  ;;  %v4329_v20 = vpop.f32.mrb[37].mxu0 }
 0x2a3   : > { %v1479_v58 = vpop.f32.mrb[12].mxu1  ;;  %v1573_v60 = vpop.f32.mrb[38].mxu0 }
 0x2a4   : > { %3757 = vst.msk [vmem:[%s6250_s21 + $0x48] sm:$0x7f] %vm867_vm2, %v1479_v58  ;;  %v4348_v62 = vpop.f32.mrb[13].mxu1  ;;  %3758 = vst.msk [vmem:[%s6250_s21 + $0x50] sm:$0x7f] %vm867_vm2, %v1573_v60  ;;  %v4367_v11 = vpop.f32.mrb[39].mxu0 }
 0x2b3   : > { %v1667_v1 = vpop.f32.mrb[14].mxu1  ;;  %v1771_v2 = vpop.f32.mrb[40].mxu0 }
 0x2b4   : > { %3759 = vst.msk [vmem:[%s6250_s21 + $0x58] sm:$0x7f] %vm867_vm2, %v1667_v1  ;;  %v4386_v4 = vpop.f32.mrb[15].mxu1  ;;  %3765 = vst.msk [vmem:[%s6250_s21 + $0x60] sm:$0x7f] %vm867_vm2, %v1771_v2  ;;  %v4405_v46 = vpop.f32.mrb[41].mxu0 }
 0x2c3   : > { %v1865_v7 = vpop.f32.mrb[16].mxu1  ;;  %v1959_v8 = vpop.f32.mrb[42].mxu0 }
 0x2c4   : > { %3766 = vst.msk [vmem:[%s6250_s21 + $0x68] sm:$0x7f] %vm867_vm2, %v1865_v7  ;;  %v4424_v9 = vpop.f32.mrb[17].mxu1  ;;  %3767 = vst.msk [vmem:[%s6250_s21 + $0x70] sm:$0x7f] %vm867_vm2, %v1959_v8  ;;  %v4443_v35 = vpop.f32.mrb[43].mxu0 }
 0x2d3   : > { %v2053_v23 = vpop.f32.mrb[18].mxu1  ;;  %v2157_v10 = vpop.f32.mrb[44].mxu0 }
 0x2d4   : > { %3768 = vst.msk [vmem:[%s6250_s21 + $0x78] sm:$0x7f] %vm867_vm2, %v2053_v23  ;;  %v4462_v55 = vpop.f32.mrb[19].mxu1  ;;  %3774 = vst.msk [vmem:[%s6250_s21 + $0x80] sm:$0x7f] %vm867_vm2, %v2157_v10  ;;  %v4481_v12 = vpop.f32.mrb[45].mxu0 }
 0x2e3   : > { %v2251_v14 = vpop.f32.mrb[20].mxu1  ;;  %v2345_v15 = vpop.f32.mrb[46].mxu0 }
 0x2e4   : > { %3775 = vst.msk [vmem:[%s6250_s21 + $0x88] sm:$0x7f] %vm867_vm2, %v2251_v14  ;;  %v4500_v63 = vpop.f32.mrb[21].mxu1  ;;  %3776 = vst.msk [vmem:[%s6250_s21 + $0x90] sm:$0x7f] %vm867_vm2, %v2345_v15  ;;  %v4519_v61 = vpop.f32.mrb[47].mxu0 }
 0x2f3   : > { %v2439_v16 = vpop.f32.mrb[22].mxu1  ;;  %v2543_v18 = vpop.f32.mrb[48].mxu0 }
 0x2f4   : > { %3777 = vst.msk [vmem:[%s6250_s21 + $0x98] sm:$0x7f] %vm867_vm2, %v2439_v16  ;;  %v4538_v6 = vpop.f32.mrb[23].mxu1  ;;  %3783 = vst.msk [vmem:[%s6250_s21 + $0xa0] sm:$0x7f] %vm867_vm2, %v2543_v18  ;;  %v4557_v19 = vpop.f32.mrb[49].mxu0 }
 0x303   : > { %v2637_v45 = vpop.f32.mrb[24].mxu1  ;;  %v2731_v22 = vpop.f32.mrb[50].mxu0 }
 0x304   : > { %3784 = vst.msk [vmem:[%s6250_s21 + $0xa8] sm:$0x7f] %vm867_vm2, %v2637_v45  ;;  %v4576_v24 = vpop.f32.mrb[25].mxu1  ;;  %3785 = vst.msk [vmem:[%s6250_s21 + $0xb0] sm:$0x7f] %vm867_vm2, %v2731_v22  ;;  %v4595_v25 = vpop.f32.mrb[51].mxu0 }
 0x313   : > { %v2825_v27 = vpop.f32.mrb[26].mxu1  ;;  %v2929_v29 = vpop.f32.mrb[52].mxu0 }
 0x314   : > { %3786 = vst.msk [vmem:[%s6250_s21 + $0xb8] sm:$0x7f] %vm867_vm2, %v2825_v27  ;;  %v4614_v59 = vpop.f32.mrb[27].mxu1  ;;  %3792 = vst.msk [vmem:[%s6250_s21 + $0xc0] sm:$0x7f] %vm867_vm2, %v2929_v29  ;;  %v4633_v30 = vpop.f32.mrb[53].mxu0 }
 0x323   : > { %v3023_v43 = vpop.f32.mrb[28].mxu1  ;;  %v3117_v31 = vpop.f32.mrb[54].mxu0 }
 0x324   : > { %3793 = vst.msk [vmem:[%s6250_s21 + $0xc8] sm:$0x7f] %vm867_vm2, %v3023_v43  ;;  %v4652_v32 = vpop.f32.mrb[29].mxu1  ;;  %3794 = vst.msk [vmem:[%s6250_s21 + $0xd0] sm:$0x7f] %vm867_vm2, %v3117_v31  ;;  %v4671_v33 = vpop.f32.mrb[55].mxu0 }
 0x333   : > { %v3211_v0 = vpop.f32.mrb[30].mxu1  ;;  %v3315_v34 = vpop.f32.mrb[56].mxu0 }
 0x334   : > { %3795 = vst.msk [vmem:[%s6250_s21 + $0xd8] sm:$0x7f] %vm867_vm2, %v3211_v0  ;;  %v4690_v36 = vpop.f32.mrb[31].mxu1  ;;  %3801 = vst.msk [vmem:[%s6250_s21 + $0xe0] sm:$0x7f] %vm867_vm2, %v3315_v34  ;;  %v4709_v38 = vpop.f32.mrb[57].mxu0 }
 0x343   : > { %v3409_v5 = vpop.f32.mrb[32].mxu1  ;;  %v3503_v39 = vpop.f32.mrb[58].mxu0 }
 0x344   : > { %3802 = vst.msk [vmem:[%s6250_s21 + $0xe8] sm:$0x7f] %vm867_vm2, %v3409_v5  ;;  %v4728_v53 = vpop.f32.mrb[33].mxu1  ;;  %3803 = vst.msk [vmem:[%s6250_s21 + $0xf0] sm:$0x7f] %vm867_vm2, %v3503_v39  ;;  %v4747_v40 = vpop.f32.mrb[59].mxu0 }
 0x353   : > { %v3597_v41 = vpop.f32.mrb[34].mxu1 }
 0x354   : > { %3804 = vst.msk [vmem:[%s6250_s21 + $0xf8] sm:$0x7f] %vm867_vm2, %v3597_v41  ;;  %v4766_v42 = vpop.f32.mrb[35].mxu1 }
 0x355 PF: > { %s20_s20 = sadd.s32 1, %s5770_s20  }
 0x356   : > { %p17_p11 = scmp.ge.s32.totalorder %s20_s20, 7  }
 0x358   :  { %19 = sbr.rel (!%p17_p11) target bundleno = 16 (0x10), region = 82 }

</bundles_post_ra>
